<compile_context>
chip_gen: v6e
topology: v6e:2x2x1
jax: 0.10.0
libtpu: 0.0.40
codegen_flags: <defaults>
</compile_context>

<pallas_src>
import numpy as np
import jax
import jax.numpy as jnp
from jax.experimental import pallas as pl
from jax.experimental.pallas import tpu as pltpu


def _round_up(a, b):
    return -(-a // b) * b


def aux_head_kernel(x_ref, w1_ref, b1_ref, w2_ref, b2_ref, wfc_ref, bfc_ref,
                    out_ref, y1_ref):
    TB = x_ref.shape[0]
    C = x_ref.shape[2]

    # ReLU on the raw 8x8 feature map; view spatial as (8, 8).
    x = jnp.maximum(x_ref[...], 0.0).reshape(TB, 8, 8, C)           # [TB,8,8,C]

    # AvgPool2d(5, stride=3, padding=0): 8x8 -> 2x2 (4 taps); windows touch
    # only valid pixels, the 1/25 factor is folded into w1 in the wrapper.
    for i in range(2):                                               # static unroll
        rows = (x[:, 3 * i] + x[:, 3 * i + 1] + x[:, 3 * i + 2]
                + x[:, 3 * i + 3] + x[:, 3 * i + 4])                 # [TB,8,C]
        for j in range(2):
            win = (rows[:, 3 * j] + rows[:, 3 * j + 1] + rows[:, 3 * j + 2]
                   + rows[:, 3 * j + 3] + rows[:, 3 * j + 4])        # [TB,C]
            k = 2 * i + j
            # Conv2d(C,128,1) with folded BN1 scale + 1/25, then bias + ReLU.
            y1 = jnp.dot(win, w1_ref[...],
                         preferred_element_type=jnp.float32)         # [TB,128]
            # Stage the tap lane-contiguously so conv2 is one K=512 matmul.
            y1_ref[:, k * 128:(k + 1) * 128] = jnp.maximum(
                y1 + b1_ref[...], 0.0)

    # Conv2d(128,768,2) over all 4 taps as a single [TB,512]@[512,768] matmul
    # (BN2 scale folded into the weight), then bias + ReLU.
    y2 = jnp.dot(y1_ref[...], w2_ref[...],
                 preferred_element_type=jnp.float32)                  # [TB,768]
    y2 = jnp.maximum(y2 + b2_ref[...], 0.0)

    # Linear(768, num_classes), lane-padded to a dense 128-wide output block.
    out_ref[...] = (jnp.dot(y2, wfc_ref[...],
                            preferred_element_type=jnp.float32)
                    + bfc_ref[...])                                   # [TB,NC_pad]


def aux_head_forward(x_nchw, params, num_classes, block_batch=256):
    """x_nchw: [N, C, 8, 8] float32 (PyTorch NCHW convention)."""
    w1f, b1, w2f, b2, wfc_pad, bfc_pad = params
    N, C, H, W = x_nchw.shape
    assert (H, W) == (8, 8), "AuxiliaryHeadCIFAR assumes 8x8 spatial input"
    nc_pad = wfc_pad.shape[1]

    # NCHW -> [N, H*W, C]  (channels on the lane axis).
    x_k = jnp.transpose(x_nchw, (0, 2, 3, 1)).reshape(N, H * W, C)

    # Batch tile: multiple of 8 (sublane), capped so the double-buffered x/out
    # blocks, the scratch and the resident weights stay inside scoped VMEM.
    weight_bytes = (w1f.size + w2f.size + wfc_pad.size) * 4
    per_sample_bytes = (2 * H * W * C + 2 * nc_pad + 512 + 768) * 4
    budget = 24 * 1024 * 1024 - weight_bytes
    TB = max(8, min(block_batch, budget // per_sample_bytes))
    TB = min((TB // 8) * 8, _round_up(N, 8))
    TB = max(8, TB)
    N_pad = _round_up(N, TB)
    if N_pad != N:
        x_k = jnp.pad(x_k, ((0, N_pad - N), (0, 0), (0, 0)))

    def const_spec(shape):
        rank = len(shape)
        return pl.BlockSpec(shape, lambda n, _r=rank: (0,) * _r)

    out = pl.pallas_call(
        aux_head_kernel,
        out_shape=jax.ShapeDtypeStruct((N_pad, nc_pad), jnp.float32),
        grid=(N_pad // TB,),
        in_specs=[
            pl.BlockSpec((TB, H * W, C), lambda n: (n, 0, 0)),       # x
            const_spec(w1f.shape), const_spec(b1.shape),             # conv1+BN1
            const_spec(w2f.shape), const_spec(b2.shape),             # conv2+BN2
            const_spec(wfc_pad.shape), const_spec(bfc_pad.shape),    # classifier
        ],
        out_specs=pl.BlockSpec((TB, nc_pad), lambda n: (n, 0)),
        scratch_shapes=[pltpu.VMEM((TB, 512), jnp.float32)],          # staged taps
        compiler_params=pltpu.CompilerParams(
            dimension_semantics=("parallel",)),
    )(x_k, w1f, b1, w2f, b2, wfc_pad, bfc_pad)
    return out[:N, :num_classes]


def ref_forward(x, w1_cin_cout, w2_oihw, g1, be1, m1, v1,
                g2, be2, m2, v2, wfc_t, bfc, eps=1e-5):
    """Pure-JAX reference matching the PyTorch module (eval-mode BN)."""
    C = x.shape[1]
    w1_oihw = w1_cin_cout.T.reshape(128, C, 1, 1)
    y = jnp.maximum(x, 0.0)
    y = jax.lax.reduce_window(y, 0.0, jax.lax.add,
                              (1, 1, 5, 5), (1, 1, 3, 3), "VALID") / 25.0
    y = jax.lax.conv_general_dilated(y, w1_oihw, (1, 1), "VALID",
                                     dimension_numbers=("NCHW", "OIHW", "NCHW"))
    y = ((y - m1[None, :, None, None]) / jnp.sqrt(v1 + eps)[None, :, None, None]
         * g1[None, :, None, None] + be1[None, :, None, None])
    y = jnp.maximum(y, 0.0)
    y = jax.lax.conv_general_dilated(y, w2_oihw, (1, 1), "VALID",
                                     dimension_numbers=("NCHW", "OIHW", "NCHW"))
    y = ((y - m2[None, :, None, None]) / jnp.sqrt(v2 + eps)[None, :, None, None]
         * g2[None, :, None, None] + be2[None, :, None, None])
    y = jnp.maximum(y, 0.0)
    y = y.reshape(y.shape[0], -1)
    return y @ wfc_t + bfc[None, :]


if __name__ == "__main__":
    N, C, num_classes = 2, 16, 10
    eps = 1e-5

    key = jax.random.PRNGKey(0)
    ks = jax.random.split(key, 13)
    x = jax.random.normal(ks[0], (N, C, 8, 8), jnp.float32)

    # Deterministic synthetic parameters (shapes from the module __init__).
    w1 = jax.random.normal(ks[1], (C, 128), jnp.float32) * 0.2           # conv1 [C,128]
    w2_oihw = jax.random.normal(ks[2], (768, 128, 2, 2), jnp.float32) * 0.05
    g1 = jax.random.uniform(ks[3], (128,), minval=0.5, maxval=1.5)
    be1 = jax.random.normal(ks[4], (128,)) * 0.1
    m1 = jax.random.normal(ks[5], (128,)) * 0.1
    v1 = jax.random.uniform(ks[6], (128,), minval=0.5, maxval=1.5)
    g2 = jax.random.uniform(ks[7], (768,), minval=0.5, maxval=1.5)
    be2 = jax.random.normal(ks[8], (768,)) * 0.1
    m2 = jax.random.normal(ks[9], (768,)) * 0.1
    v2 = jax.random.uniform(ks[10], (768,), minval=0.5, maxval=1.5)
    wfc_t = jax.random.normal(ks[11], (768, num_classes), jnp.float32) * 0.05
    bfc = jax.random.normal(ks[12], (num_classes,), jnp.float32) * 0.1

    # Fold eval-mode BatchNorm into per-channel scale/bias; fold the scales
    # (and the 1/25 pooling factor) directly into the conv weights so the
    # kernel only does matmul + bias-add + ReLU.
    s1_vec = g1 / jnp.sqrt(v1 + eps)
    b1 = (be1 - m1 * s1_vec).reshape(1, 128)
    w1f = (w1 * s1_vec[None, :]) * (1.0 / 25.0)                          # [C,128]

    s2_vec = g2 / jnp.sqrt(v2 + eps)
    b2 = (be2 - m2 * s2_vec).reshape(1, 768)
    # Conv2 weight OIHW -> taps stacked along K: [4*128, 768], BN2 scale folded.
    w2f = (jnp.transpose(w2_oihw, (2, 3, 1, 0)).reshape(512, 768)
           * s2_vec[None, :])

    # Lane-pad the classifier to 128 output lanes (dense, unmasked stores).
    nc_pad = max(128, _round_up(num_classes, 128))
    wfc_pad = jnp.zeros((768, nc_pad), jnp.float32).at[:, :num_classes].set(wfc_t)
    bfc_pad = jnp.zeros((1, nc_pad), jnp.float32).at[0, :num_classes].set(bfc)

    params = (w1f, b1, w2f, b2, wfc_pad, bfc_pad)
    out = aux_head_forward(x, params, num_classes)
    out = jax.block_until_ready(out)

    with jax.default_matmul_precision("highest"):
        ref = ref_forward(x, w1, w2_oihw, g1, be1, m1, v1,
                          g2, be2, m2, v2, wfc_t, bfc, eps)
    np.testing.assert_allclose(np.asarray(out), np.asarray(ref),
                               rtol=1e-2, atol=1e-2)
    print("KERNEL_OK")
</pallas_src>

<mosaic_0001>
module attributes {stable_mosaic.version = 11 : i64} {
  func.func @aux_head_kernel(%arg0: i32, %arg1: memref<8x64x16xf32, #tpu.memory_space<vmem>>, %arg2: memref<16x128xf32, #tpu.memory_space<vmem>>, %arg3: memref<1x128xf32, #tpu.memory_space<vmem>>, %arg4: memref<512x768xf32, #tpu.memory_space<vmem>>, %arg5: memref<1x768xf32, #tpu.memory_space<vmem>>, %arg6: memref<768x128xf32, #tpu.memory_space<vmem>>, %arg7: memref<1x128xf32, #tpu.memory_space<vmem>>, %arg8: memref<8x128xf32, #tpu.memory_space<vmem>>, %arg9: memref<8x512xf32, #tpu.memory_space<vmem>>) attributes {dimension_semantics = [#tpu.dimension_semantics<parallel>], iteration_bounds = array<i64: 1>, scalar_prefetch = 0 : i64, scratch_operands = 1 : i64, tpu.core_type = #tpu.core_type<tc>, window_params = [{transform_indices = @transform_0, window_bounds = array<i64: 8, 64, 16>}, {pipeline_mode = #tpu.pipeline_mode<synchronous>, transform_indices = @transform_1, window_bounds = array<i64: 16, 128>}, {pipeline_mode = #tpu.pipeline_mode<synchronous>, transform_indices = @transform_2, window_bounds = array<i64: 1, 128>}, {pipeline_mode = #tpu.pipeline_mode<synchronous>, transform_indices = @transform_3, window_bounds = array<i64: 512, 768>}, {pipeline_mode = #tpu.pipeline_mode<synchronous>, transform_indices = @transform_4, window_bounds = array<i64: 1, 768>}, {pipeline_mode = #tpu.pipeline_mode<synchronous>, transform_indices = @transform_5, window_bounds = array<i64: 768, 128>}, {pipeline_mode = #tpu.pipeline_mode<synchronous>, transform_indices = @transform_6, window_bounds = array<i64: 1, 128>}, {transform_indices = @transform_7, window_bounds = array<i64: 8, 128>}]} {
    %c0 = arith.constant 0 : index
    %c0_0 = arith.constant 0 : index
    %c0_1 = arith.constant 0 : index
    %0 = vector.load %arg1[%c0, %c0_0, %c0_1] : memref<8x64x16xf32, #tpu.memory_space<vmem>>, vector<8x64x16xf32>
    %cst = arith.constant 0.000000e+00 : f32
    %1 = vector.broadcast %cst : f32 to vector<8x64x16xf32>
    %2 = arith.maximumf %0, %1 : vector<8x64x16xf32>
    %3 = vector.shape_cast %2 : vector<8x64x16xf32> to vector<8x8x8x16xf32>
    %4 = vector.extract_strided_slice %3 {offsets = [0, 0, 0, 0], sizes = [8, 1, 8, 16], strides = [1, 1, 1, 1]} : vector<8x8x8x16xf32> to vector<8x1x8x16xf32>
    %5 = vector.shape_cast %4 : vector<8x1x8x16xf32> to vector<8x8x16xf32>
    %6 = vector.extract_strided_slice %3 {offsets = [0, 1, 0, 0], sizes = [8, 1, 8, 16], strides = [1, 1, 1, 1]} : vector<8x8x8x16xf32> to vector<8x1x8x16xf32>
    %7 = vector.shape_cast %6 : vector<8x1x8x16xf32> to vector<8x8x16xf32>
    %8 = arith.addf %5, %7 : vector<8x8x16xf32>
    %9 = vector.extract_strided_slice %3 {offsets = [0, 2, 0, 0], sizes = [8, 1, 8, 16], strides = [1, 1, 1, 1]} : vector<8x8x8x16xf32> to vector<8x1x8x16xf32>
    %10 = vector.shape_cast %9 : vector<8x1x8x16xf32> to vector<8x8x16xf32>
    %11 = arith.addf %8, %10 : vector<8x8x16xf32>
    %12 = vector.extract_strided_slice %3 {offsets = [0, 3, 0, 0], sizes = [8, 1, 8, 16], strides = [1, 1, 1, 1]} : vector<8x8x8x16xf32> to vector<8x1x8x16xf32>
    %13 = vector.shape_cast %12 : vector<8x1x8x16xf32> to vector<8x8x16xf32>
    %14 = arith.addf %11, %13 : vector<8x8x16xf32>
    %15 = vector.extract_strided_slice %3 {offsets = [0, 4, 0, 0], sizes = [8, 1, 8, 16], strides = [1, 1, 1, 1]} : vector<8x8x8x16xf32> to vector<8x1x8x16xf32>
    %16 = vector.shape_cast %15 : vector<8x1x8x16xf32> to vector<8x8x16xf32>
    %17 = arith.addf %14, %16 : vector<8x8x16xf32>
    %18 = vector.extract_strided_slice %17 {offsets = [0, 0, 0], sizes = [8, 1, 16], strides = [1, 1, 1]} : vector<8x8x16xf32> to vector<8x1x16xf32>
    %19 = vector.shape_cast %18 : vector<8x1x16xf32> to vector<8x16xf32>
    %20 = vector.extract_strided_slice %17 {offsets = [0, 1, 0], sizes = [8, 1, 16], strides = [1, 1, 1]} : vector<8x8x16xf32> to vector<8x1x16xf32>
    %21 = vector.shape_cast %20 : vector<8x1x16xf32> to vector<8x16xf32>
    %22 = arith.addf %19, %21 : vector<8x16xf32>
    %23 = vector.extract_strided_slice %17 {offsets = [0, 2, 0], sizes = [8, 1, 16], strides = [1, 1, 1]} : vector<8x8x16xf32> to vector<8x1x16xf32>
    %24 = vector.shape_cast %23 : vector<8x1x16xf32> to vector<8x16xf32>
    %25 = arith.addf %22, %24 : vector<8x16xf32>
    %26 = vector.extract_strided_slice %17 {offsets = [0, 3, 0], sizes = [8, 1, 16], strides = [1, 1, 1]} : vector<8x8x16xf32> to vector<8x1x16xf32>
    %27 = vector.shape_cast %26 : vector<8x1x16xf32> to vector<8x16xf32>
    %28 = arith.addf %25, %27 : vector<8x16xf32>
    %29 = vector.extract_strided_slice %17 {offsets = [0, 4, 0], sizes = [8, 1, 16], strides = [1, 1, 1]} : vector<8x8x16xf32> to vector<8x1x16xf32>
    %30 = vector.shape_cast %29 : vector<8x1x16xf32> to vector<8x16xf32>
    %31 = arith.addf %28, %30 : vector<8x16xf32>
    %c0_2 = arith.constant 0 : index
    %c0_3 = arith.constant 0 : index
    %32 = vector.load %arg2[%c0_2, %c0_3] : memref<16x128xf32, #tpu.memory_space<vmem>>, vector<16x128xf32>
    %cst_4 = arith.constant dense<0.000000e+00> : vector<8x128xf32>
    %33 = tpu.matmul %31, %32, %cst_4 {dimension_numbers = #tpu.dot_dimension_numbers<[1], [0], [0], [1], [0, 0, 1, 1], [], []>} : vector<8x16xf32>, vector<16x128xf32>, vector<8x128xf32> -> vector<8x128xf32>
    %c0_5 = arith.constant 0 : index
    %c0_6 = arith.constant 0 : index
    %34 = vector.load %arg3[%c0_5, %c0_6] : memref<1x128xf32, #tpu.memory_space<vmem>>, vector<1x128xf32>
    %35 = vector.broadcast %34 : vector<1x128xf32> to vector<8x128xf32>
    %36 = arith.addf %33, %35 : vector<8x128xf32>
    %cst_7 = arith.constant 0.000000e+00 : f32
    %37 = vector.broadcast %cst_7 : f32 to vector<8x128xf32>
    %38 = arith.maximumf %36, %37 : vector<8x128xf32>
    %c0_8 = arith.constant 0 : index
    %c0_9 = arith.constant 0 : index
    %39 = vector.load %arg9[%c0_8, %c0_9] : memref<8x512xf32, #tpu.memory_space<vmem>>, vector<8x128xf32>
    tpu.vector_store %arg9[%c0_8, %c0_9], %38 {strides = array<i32>} : memref<8x512xf32, #tpu.memory_space<vmem>>, vector<8x128xf32>,
    %40 = vector.extract_strided_slice %17 {offsets = [0, 3, 0], sizes = [8, 1, 16], strides = [1, 1, 1]} : vector<8x8x16xf32> to vector<8x1x16xf32>
    %41 = vector.shape_cast %40 : vector<8x1x16xf32> to vector<8x16xf32>
    %42 = vector.extract_strided_slice %17 {offsets = [0, 4, 0], sizes = [8, 1, 16], strides = [1, 1, 1]} : vector<8x8x16xf32> to vector<8x1x16xf32>
    %43 = vector.shape_cast %42 : vector<8x1x16xf32> to vector<8x16xf32>
    %44 = arith.addf %41, %43 : vector<8x16xf32>
    %45 = vector.extract_strided_slice %17 {offsets = [0, 5, 0], sizes = [8, 1, 16], strides = [1, 1, 1]} : vector<8x8x16xf32> to vector<8x1x16xf32>
    %46 = vector.shape_cast %45 : vector<8x1x16xf32> to vector<8x16xf32>
    %47 = arith.addf %44, %46 : vector<8x16xf32>
    %48 = vector.extract_strided_slice %17 {offsets = [0, 6, 0], sizes = [8, 1, 16], strides = [1, 1, 1]} : vector<8x8x16xf32> to vector<8x1x16xf32>
    %49 = vector.shape_cast %48 : vector<8x1x16xf32> to vector<8x16xf32>
    %50 = arith.addf %47, %49 : vector<8x16xf32>
    %51 = vector.extract_strided_slice %17 {offsets = [0, 7, 0], sizes = [8, 1, 16], strides = [1, 1, 1]} : vector<8x8x16xf32> to vector<8x1x16xf32>
    %52 = vector.shape_cast %51 : vector<8x1x16xf32> to vector<8x16xf32>
    %53 = arith.addf %50, %52 : vector<8x16xf32>
    %c0_10 = arith.constant 0 : index
    %c0_11 = arith.constant 0 : index
    %54 = vector.load %arg2[%c0_10, %c0_11] : memref<16x128xf32, #tpu.memory_space<vmem>>, vector<16x128xf32>
    %cst_12 = arith.constant dense<0.000000e+00> : vector<8x128xf32>
    %55 = tpu.matmul %53, %54, %cst_12 {dimension_numbers = #tpu.dot_dimension_numbers<[1], [0], [0], [1], [0, 0, 1, 1], [], []>} : vector<8x16xf32>, vector<16x128xf32>, vector<8x128xf32> -> vector<8x128xf32>
    %c0_13 = arith.constant 0 : index
    %c0_14 = arith.constant 0 : index
    %56 = vector.load %arg3[%c0_13, %c0_14] : memref<1x128xf32, #tpu.memory_space<vmem>>, vector<1x128xf32>
    %57 = vector.broadcast %56 : vector<1x128xf32> to vector<8x128xf32>
    %58 = arith.addf %55, %57 : vector<8x128xf32>
    %cst_15 = arith.constant 0.000000e+00 : f32
    %59 = vector.broadcast %cst_15 : f32 to vector<8x128xf32>
    %60 = arith.maximumf %58, %59 : vector<8x128xf32>
    %c0_16 = arith.constant 0 : index
    %c128 = arith.constant 128 : index
    %61 = vector.load %arg9[%c0_16, %c128] : memref<8x512xf32, #tpu.memory_space<vmem>>, vector<8x128xf32>
    tpu.vector_store %arg9[%c0_16, %c128], %60 {strides = array<i32>} : memref<8x512xf32, #tpu.memory_space<vmem>>, vector<8x128xf32>,
    %62 = vector.extract_strided_slice %3 {offsets = [0, 3, 0, 0], sizes = [8, 1, 8, 16], strides = [1, 1, 1, 1]} : vector<8x8x8x16xf32> to vector<8x1x8x16xf32>
    %63 = vector.shape_cast %62 : vector<8x1x8x16xf32> to vector<8x8x16xf32>
    %64 = vector.extract_strided_slice %3 {offsets = [0, 4, 0, 0], sizes = [8, 1, 8, 16], strides = [1, 1, 1, 1]} : vector<8x8x8x16xf32> to vector<8x1x8x16xf32>
    %65 = vector.shape_cast %64 : vector<8x1x8x16xf32> to vector<8x8x16xf32>
    %66 = arith.addf %63, %65 : vector<8x8x16xf32>
    %67 = vector.extract_strided_slice %3 {offsets = [0, 5, 0, 0], sizes = [8, 1, 8, 16], strides = [1, 1, 1, 1]} : vector<8x8x8x16xf32> to vector<8x1x8x16xf32>
    %68 = vector.shape_cast %67 : vector<8x1x8x16xf32> to vector<8x8x16xf32>
    %69 = arith.addf %66, %68 : vector<8x8x16xf32>
    %70 = vector.extract_strided_slice %3 {offsets = [0, 6, 0, 0], sizes = [8, 1, 8, 16], strides = [1, 1, 1, 1]} : vector<8x8x8x16xf32> to vector<8x1x8x16xf32>
    %71 = vector.shape_cast %70 : vector<8x1x8x16xf32> to vector<8x8x16xf32>
    %72 = arith.addf %69, %71 : vector<8x8x16xf32>
    %73 = vector.extract_strided_slice %3 {offsets = [0, 7, 0, 0], sizes = [8, 1, 8, 16], strides = [1, 1, 1, 1]} : vector<8x8x8x16xf32> to vector<8x1x8x16xf32>
    %74 = vector.shape_cast %73 : vector<8x1x8x16xf32> to vector<8x8x16xf32>
    %75 = arith.addf %72, %74 : vector<8x8x16xf32>
    %76 = vector.extract_strided_slice %75 {offsets = [0, 0, 0], sizes = [8, 1, 16], strides = [1, 1, 1]} : vector<8x8x16xf32> to vector<8x1x16xf32>
    %77 = vector.shape_cast %76 : vector<8x1x16xf32> to vector<8x16xf32>
    %78 = vector.extract_strided_slice %75 {offsets = [0, 1, 0], sizes = [8, 1, 16], strides = [1, 1, 1]} : vector<8x8x16xf32> to vector<8x1x16xf32>
    %79 = vector.shape_cast %78 : vector<8x1x16xf32> to vector<8x16xf32>
    %80 = arith.addf %77, %79 : vector<8x16xf32>
    %81 = vector.extract_strided_slice %75 {offsets = [0, 2, 0], sizes = [8, 1, 16], strides = [1, 1, 1]} : vector<8x8x16xf32> to vector<8x1x16xf32>
    %82 = vector.shape_cast %81 : vector<8x1x16xf32> to vector<8x16xf32>
    %83 = arith.addf %80, %82 : vector<8x16xf32>
    %84 = vector.extract_strided_slice %75 {offsets = [0, 3, 0], sizes = [8, 1, 16], strides = [1, 1, 1]} : vector<8x8x16xf32> to vector<8x1x16xf32>
    %85 = vector.shape_cast %84 : vector<8x1x16xf32> to vector<8x16xf32>
    %86 = arith.addf %83, %85 : vector<8x16xf32>
    %87 = vector.extract_strided_slice %75 {offsets = [0, 4, 0], sizes = [8, 1, 16], strides = [1, 1, 1]} : vector<8x8x16xf32> to vector<8x1x16xf32>
    %88 = vector.shape_cast %87 : vector<8x1x16xf32> to vector<8x16xf32>
    %89 = arith.addf %86, %88 : vector<8x16xf32>
    %c0_17 = arith.constant 0 : index
    %c0_18 = arith.constant 0 : index
    %90 = vector.load %arg2[%c0_17, %c0_18] : memref<16x128xf32, #tpu.memory_space<vmem>>, vector<16x128xf32>
    %cst_19 = arith.constant dense<0.000000e+00> : vector<8x128xf32>
    %91 = tpu.matmul %89, %90, %cst_19 {dimension_numbers = #tpu.dot_dimension_numbers<[1], [0], [0], [1], [0, 0, 1, 1], [], []>} : vector<8x16xf32>, vector<16x128xf32>, vector<8x128xf32> -> vector<8x128xf32>
    %c0_20 = arith.constant 0 : index
    %c0_21 = arith.constant 0 : index
    %92 = vector.load %arg3[%c0_20, %c0_21] : memref<1x128xf32, #tpu.memory_space<vmem>>, vector<1x128xf32>
    %93 = vector.broadcast %92 : vector<1x128xf32> to vector<8x128xf32>
    %94 = arith.addf %91, %93 : vector<8x128xf32>
    %cst_22 = arith.constant 0.000000e+00 : f32
    %95 = vector.broadcast %cst_22 : f32 to vector<8x128xf32>
    %96 = arith.maximumf %94, %95 : vector<8x128xf32>
    %c0_23 = arith.constant 0 : index
    %c256 = arith.constant 256 : index
    %97 = vector.load %arg9[%c0_23, %c256] : memref<8x512xf32, #tpu.memory_space<vmem>>, vector<8x128xf32>
    tpu.vector_store %arg9[%c0_23, %c256], %96 {strides = array<i32>} : memref<8x512xf32, #tpu.memory_space<vmem>>, vector<8x128xf32>,
    %98 = vector.extract_strided_slice %75 {offsets = [0, 3, 0], sizes = [8, 1, 16], strides = [1, 1, 1]} : vector<8x8x16xf32> to vector<8x1x16xf32>
    %99 = vector.shape_cast %98 : vector<8x1x16xf32> to vector<8x16xf32>
    %100 = vector.extract_strided_slice %75 {offsets = [0, 4, 0], sizes = [8, 1, 16], strides = [1, 1, 1]} : vector<8x8x16xf32> to vector<8x1x16xf32>
    %101 = vector.shape_cast %100 : vector<8x1x16xf32> to vector<8x16xf32>
    %102 = arith.addf %99, %101 : vector<8x16xf32>
    %103 = vector.extract_strided_slice %75 {offsets = [0, 5, 0], sizes = [8, 1, 16], strides = [1, 1, 1]} : vector<8x8x16xf32> to vector<8x1x16xf32>
    %104 = vector.shape_cast %103 : vector<8x1x16xf32> to vector<8x16xf32>
    %105 = arith.addf %102, %104 : vector<8x16xf32>
    %106 = vector.extract_strided_slice %75 {offsets = [0, 6, 0], sizes = [8, 1, 16], strides = [1, 1, 1]} : vector<8x8x16xf32> to vector<8x1x16xf32>
    %107 = vector.shape_cast %106 : vector<8x1x16xf32> to vector<8x16xf32>
    %108 = arith.addf %105, %107 : vector<8x16xf32>
    %109 = vector.extract_strided_slice %75 {offsets = [0, 7, 0], sizes = [8, 1, 16], strides = [1, 1, 1]} : vector<8x8x16xf32> to vector<8x1x16xf32>
    %110 = vector.shape_cast %109 : vector<8x1x16xf32> to vector<8x16xf32>
    %111 = arith.addf %108, %110 : vector<8x16xf32>
    %c0_24 = arith.constant 0 : index
    %c0_25 = arith.constant 0 : index
    %112 = vector.load %arg2[%c0_24, %c0_25] : memref<16x128xf32, #tpu.memory_space<vmem>>, vector<16x128xf32>
    %cst_26 = arith.constant dense<0.000000e+00> : vector<8x128xf32>
    %113 = tpu.matmul %111, %112, %cst_26 {dimension_numbers = #tpu.dot_dimension_numbers<[1], [0], [0], [1], [0, 0, 1, 1], [], []>} : vector<8x16xf32>, vector<16x128xf32>, vector<8x128xf32> -> vector<8x128xf32>
    %c0_27 = arith.constant 0 : index
    %c0_28 = arith.constant 0 : index
    %114 = vector.load %arg3[%c0_27, %c0_28] : memref<1x128xf32, #tpu.memory_space<vmem>>, vector<1x128xf32>
    %115 = vector.broadcast %114 : vector<1x128xf32> to vector<8x128xf32>
    %116 = arith.addf %113, %115 : vector<8x128xf32>
    %cst_29 = arith.constant 0.000000e+00 : f32
    %117 = vector.broadcast %cst_29 : f32 to vector<8x128xf32>
    %118 = arith.maximumf %116, %117 : vector<8x128xf32>
    %c0_30 = arith.constant 0 : index
    %c384 = arith.constant 384 : index
    %119 = vector.load %arg9[%c0_30, %c384] : memref<8x512xf32, #tpu.memory_space<vmem>>, vector<8x128xf32>
    tpu.vector_store %arg9[%c0_30, %c384], %118 {strides = array<i32>} : memref<8x512xf32, #tpu.memory_space<vmem>>, vector<8x128xf32>,
    %c0_31 = arith.constant 0 : index
    %c0_32 = arith.constant 0 : index
    %120 = vector.load %arg9[%c0_31, %c0_32] : memref<8x512xf32, #tpu.memory_space<vmem>>, vector<8x512xf32>
    %c0_33 = arith.constant 0 : index
    %c0_34 = arith.constant 0 : index
    %121 = vector.load %arg4[%c0_33, %c0_34] : memref<512x768xf32, #tpu.memory_space<vmem>>, vector<512x768xf32>
    %cst_35 = arith.constant dense<0.000000e+00> : vector<8x768xf32>
    %122 = tpu.matmul %120, %121, %cst_35 {dimension_numbers = #tpu.dot_dimension_numbers<[1], [0], [0], [1], [0, 0, 1, 1], [], []>} : vector<8x512xf32>, vector<512x768xf32>, vector<8x768xf32> -> vector<8x768xf32>
    %c0_36 = arith.constant 0 : index
    %c0_37 = arith.constant 0 : index
    %123 = vector.load %arg5[%c0_36, %c0_37] : memref<1x768xf32, #tpu.memory_space<vmem>>, vector<1x768xf32>
    %124 = vector.broadcast %123 : vector<1x768xf32> to vector<8x768xf32>
    %125 = arith.addf %122, %124 : vector<8x768xf32>
    %cst_38 = arith.constant 0.000000e+00 : f32
    %126 = vector.broadcast %cst_38 : f32 to vector<8x768xf32>
    %127 = arith.maximumf %125, %126 : vector<8x768xf32>
    %c0_39 = arith.constant 0 : index
    %c0_40 = arith.constant 0 : index
    %128 = vector.load %arg6[%c0_39, %c0_40] : memref<768x128xf32, #tpu.memory_space<vmem>>, vector<768x128xf32>
    %cst_41 = arith.constant dense<0.000000e+00> : vector<8x128xf32>
    %129 = tpu.matmul %127, %128, %cst_41 {dimension_numbers = #tpu.dot_dimension_numbers<[1], [0], [0], [1], [0, 0, 1, 1], [], []>} : vector<8x768xf32>, vector<768x128xf32>, vector<8x128xf32> -> vector<8x128xf32>
    %c0_42 = arith.constant 0 : index
    %c0_43 = arith.constant 0 : index
    %130 = vector.load %arg7[%c0_42, %c0_43] : memref<1x128xf32, #tpu.memory_space<vmem>>, vector<1x128xf32>
    %131 = vector.broadcast %130 : vector<1x128xf32> to vector<8x128xf32>
    %132 = arith.addf %129, %131 : vector<8x128xf32>
    %c0_44 = arith.constant 0 : index
    %c0_45 = arith.constant 0 : index
    %133 = vector.load %arg8[%c0_44, %c0_45] : memref<8x128xf32, #tpu.memory_space<vmem>>, vector<8x128xf32>
    tpu.vector_store %arg8[%c0_44, %c0_45], %132 {strides = array<i32>} : memref<8x128xf32, #tpu.memory_space<vmem>>, vector<8x128xf32>,
    return
  }
  func.func @transform_0(%arg0: i32) -> (i32, i32, i32) {
    %c0_i32 = arith.constant 0 : i32
    %c0_i32_0 = arith.constant 0 : i32
    %c0_i32_1 = arith.constant 0 : i32
    return %arg0, %c0_i32, %c0_i32_0 : i32, i32, i32
  }
  func.func @transform_1(%arg0: i32) -> (i32, i32) {
    %c0_i32 = arith.constant 0 : i32
    %c0_i32_0 = arith.constant 0 : i32
    %c0_i32_1 = arith.constant 0 : i32
    return %c0_i32, %c0_i32_0 : i32, i32
  }
  func.func @transform_2(%arg0: i32) -> (i32, i32) {
    %c0_i32 = arith.constant 0 : i32
    %c0_i32_0 = arith.constant 0 : i32
    %c0_i32_1 = arith.constant 0 : i32
    return %c0_i32, %c0_i32_0 : i32, i32
  }
  func.func @transform_3(%arg0: i32) -> (i32, i32) {
    %c0_i32 = arith.constant 0 : i32
    %c0_i32_0 = arith.constant 0 : i32
    %c0_i32_1 = arith.constant 0 : i32
    return %c0_i32, %c0_i32_0 : i32, i32
  }
  func.func @transform_4(%arg0: i32) -> (i32, i32) {
    %c0_i32 = arith.constant 0 : i32
    %c0_i32_0 = arith.constant 0 : i32
    %c0_i32_1 = arith.constant 0 : i32
    return %c0_i32, %c0_i32_0 : i32, i32
  }
  func.func @transform_5(%arg0: i32) -> (i32, i32) {
    %c0_i32 = arith.constant 0 : i32
    %c0_i32_0 = arith.constant 0 : i32
    %c0_i32_1 = arith.constant 0 : i32
    return %c0_i32, %c0_i32_0 : i32, i32
  }
  func.func @transform_6(%arg0: i32) -> (i32, i32) {
    %c0_i32 = arith.constant 0 : i32
    %c0_i32_0 = arith.constant 0 : i32
    %c0_i32_1 = arith.constant 0 : i32
    return %c0_i32, %c0_i32_0 : i32, i32
  }
  func.func @transform_7(%arg0: i32) -> (i32, i32) {
    %c0_i32 = arith.constant 0 : i32
    %c0_i32_0 = arith.constant 0 : i32
    return %arg0, %c0_i32 : i32, i32
  }
}

</mosaic_0001>

<bundles_post_ra>
// kernel: tpu_custom_call.1
= control target key start
LH: loop header
LB: loop body
LE: loop exit
PB: predicated region body
PF: predicated region fallthrough
CT: control target
= control target key end

     0   :  { %12 = vsyncpa [#allocation4], 0  ;;  %s3143_s0 = inlined_call_operand.vmem [shape: f32[8,64,16], index: 0, kind: input, shape index: {}]   ;;  %s3144_s1 = inlined_call_operand.hbm [shape: f32[16,128], index: 1, kind: input, shape index: {}]   ;;  %s3145_s2 = inlined_call_operand.hbm [shape: f32[1,128], index: 2, kind: input, shape index: {}]   ;;  %s3146_s3 = inlined_call_operand.hbm [shape: f32[512,768], index: 3, kind: input, shape index: {}]   ;;  %s3147_s4 = inlined_call_operand.hbm [shape: f32[1,768], index: 4, kind: input, shape index: {}]   ;;  %s3148_s5 = inlined_call_operand.hbm [shape: f32[768,128], index: 5, kind: input, shape index: {}]   ;;  %s3149_s6 = inlined_call_operand.hbm [shape: f32[1,128], index: 6, kind: input, shape index: {}]   ;;  %s3150_s7 = inlined_call_operand.hbm [shape: f32[8,128], index: 7, kind: output, shape index: {}]  }
   0x1   :  { %13 = vsyncpa [#allocation7], 0 }
   0x2   :  { %14 = vsyncpa [#allocation10], 0 }
   0x3   :  { %15 = vsyncpa [#allocation13], 0 }
   0x4   :  { %16 = vsyncpa [#allocation5], 0  ;;  %s2418_s24 = smov [#allocation6]   ;;  %s2419_s26 = smov [#allocation9]  }
   0x5   :  { %s37_s25 = sshll.u32 %s2418_s24, 4  ;;  %s59_s27 = sshll.u32 %s2419_s26, 4  ;;  %s38_s25 = int_to_ptr.vmem [resolvable:$true] %s37_s25  ;;  %s60_s27 = int_to_ptr.vmem [resolvable:$true] %s59_s27 }
   0x6   :  { %s2276_s28 = scalar_lea.vmem %s38_s25, 16  ;;  %s2280_s29 = scalar_lea.vmem %s38_s25, 32 }
   0x7   :  { %p2277_p0 = scmp.ne.s32.totalorder %s38_s25, %s2276_s28  ;;  %p2281_p1 = scmp.lt.s32.totalorder %s38_s25, %s38_s25 }
   0x8   :  { %p2282_p2 = scmp.lt.s32.totalorder %s2280_s29, %s2276_s28 }
   0xa   :  { %p2283_p3 = por %p2282_p2, %p2281_p1 }
   0xc   :  { %p2284_p4 = pnand %p2283_p3, %p2277_p0 }
   0xe   :  { %2287 = shalt.err (!%p2284_p4)
}
   0xf   :  { %40 = dma.hbm_to_vmem [thread:$0]  %s3145_s2, 16, %s38_s25, [#allocation7]  }
  0x10   :  { %s2296_s9 = scalar_lea.vmem %s60_s27, 96  ;;  %p2301_p6 = scmp.lt.s32.totalorder %s60_s27, %s60_s27 }
  0x11   :  { %p2297_p5 = scmp.ne.s32.totalorder %s60_s27, %s2296_s9  ;;  %p2302_p7 = scmp.lt.s32.totalorder %s2296_s9, %s2296_s9 }
  0x13   :  { %p2303_p8 = por %p2302_p7, %p2301_p6 }
  0x15   :  { %p2304_p9 = pnand %p2303_p8, %p2297_p5 }
  0x17   :  { %2307 = shalt.err (!%p2304_p9)
}
  0x18   :  { %62 = dma.hbm_to_vmem [thread:$0]  %s3147_s4, 96, %s60_s27, [#allocation10]  }
  0x19   :  { %s2420_s12 = smov [#allocation3]  }
  0x1a   :  { %s24_s13 = sshll.u32 %s2420_s12, 4  ;;  %s25_s13 = int_to_ptr.vmem [resolvable:$true] %s24_s13 }
  0x1b   :  { %s2316_s14 = scalar_lea.vmem %s25_s13, 256  ;;  %p2321_p11 = scmp.lt.s32.totalorder %s25_s13, %s25_s13 }
  0x1c   :  { %p2317_p10 = scmp.ne.s32.totalorder %s25_s13, %s2316_s14  ;;  %p2322_p12 = scmp.lt.s32.totalorder %s2316_s14, %s2316_s14 }
  0x1e   :  { %p2323_p13 = por %p2322_p12, %p2321_p11 }
  0x20   :  { %p2324_p0 = pnand %p2323_p13, %p2317_p10 }
  0x22   :  { %2327 = shalt.err (!%p2324_p0)
}
  0x23   :  { %s2421_s2 = smov 128   ;;  %s2422_s15 = smov 8  }
  0x24   :  { %30 = dma.hbm_to_vmem [thread:$0]  %s3144_s1, 256, %s25_s13, [#allocation4], %s2421_s2, %s2421_s2, %s2422_s15  }
  0x25   :  { %s2423_s4 = smov [#allocation8]  }
  0x26   :  { %s46_s18 = sshll.u32 %s2423_s4, 4  ;;  %s47_s18 = int_to_ptr.vmem [resolvable:$true] %s46_s18 }
  0x27   :  { %s2336_s19 = scalar_lea.vmem %s47_s18, 49152  ;;  %p2341_p2 = scmp.lt.s32.totalorder %s47_s18, %s47_s18 }
  0x28   :  { %p2337_p1 = scmp.ne.s32.totalorder %s47_s18, %s2336_s19  ;;  %p2342_p3 = scmp.lt.s32.totalorder %s2336_s19, %s2336_s19 }
  0x2a   :  { %p2343_p4 = por %p2342_p3, %p2341_p2 }
  0x2c   :  { %p2344_p5 = pnand %p2343_p4, %p2337_p1 }
  0x2e   :  { %2347 = shalt.err (!%p2344_p5)
}
  0x2f   :  { %s2424_s20 = smov 768   ;;  %s2425_s21 = smov 48  }
  0x30   :  { %52 = dma.hbm_to_vmem [thread:$0]  %s3146_s3, 49152, %s47_s18, [#allocation7], %s2424_s20, %s2424_s20, %s2425_s21  }
  0x31   :  { %s2426_s24 = smov [#allocation11]   ;;  %s2427_s26 = smov [#allocation12]  }
  0x32   :  { %s68_s25 = sshll.u32 %s2426_s24, 4  ;;  %s81_s1 = sshll.u32 %s2427_s26, 4  ;;  %s69_s25 = int_to_ptr.vmem [resolvable:$true] %s68_s25  ;;  %s82_s1 = int_to_ptr.vmem [resolvable:$true] %s81_s1 }
  0x33   :  { %s2356_s27 = scalar_lea.vmem %s69_s25, 12288  ;;  %p2361_p7 = scmp.lt.s32.totalorder %s69_s25, %s69_s25 }
  0x34   :  { %p2357_p6 = scmp.ne.s32.totalorder %s69_s25, %s2356_s27  ;;  %p2362_p8 = scmp.lt.s32.totalorder %s2356_s27, %s2356_s27 }
  0x36   :  { %p2363_p9 = por %p2362_p8, %p2361_p7 }
  0x38   :  { %p2364_p10 = pnand %p2363_p9, %p2357_p6 }
  0x3a   :  { %2367 = shalt.err (!%p2364_p10)
}
  0x3b   :  { %74 = dma.hbm_to_vmem [thread:$0]  %s3148_s5, 12288, %s69_s25, [#allocation10], %s2421_s2, %s2421_s2, %s2422_s15  }
  0x3c   :  { %s2376_s3 = scalar_lea.vmem %s82_s1, 16  ;;  %s2380_s30 = scalar_lea.vmem %s82_s1, 32 }
  0x3d   :  { %p2377_p11 = scmp.ne.s32.totalorder %s82_s1, %s2376_s3  ;;  %p2381_p12 = scmp.lt.s32.totalorder %s82_s1, %s82_s1 }
  0x3e   :  { %p2382_p13 = scmp.lt.s32.totalorder %s2380_s30, %s2376_s3 }
  0x40   :  { %p2383_p0 = por %p2382_p13, %p2381_p12 }
  0x42   :  { %p2384_p1 = pnand %p2383_p0, %p2377_p11 }
  0x44   :  { %2387 = shalt.err (!%p2384_p1)
}
  0x45   :  { %84 = dma.hbm_to_vmem [thread:$0]  %s3149_s6, 16, %s82_s1, [#allocation13]  }
  0x46   :  { %2408 = dma.done.wait [#allocation4], 256  }
  0x47   :  { %2409 = vsyncadd [#allocation4], 4294967040 }
  0x48   :  { %2410 = dma.done.wait [#allocation7], 49168  }
  0x49   :  { %2411 = vsyncadd [#allocation7], 4294918128 }
  0x4a   :  { %2412 = dma.done.wait [#allocation10], 12384  }
  0x4b   :  { %2413 = vsyncadd [#allocation10], 4294954912 }
  0x4c   :  { %2414 = dma.done.wait [#allocation13], 16  }
  0x4d   :  { %2415 = vsyncadd [#allocation13], 4294967280  ;;  %v3151_v0 = vmov 0.0   ;;  %vm2429_vm0 = vmmov 0   ;;  %v2498_v1 = vld [vmem:[#allocation3 + $0x8] sm:$0xff]  ;;  %v2500_v2 = vld [vmem:[#allocation3] sm:$0xff] }
  0x4e   :  { %2225 = vmatprep.subr.mxu1 %v3151_v0  ;;  %2229 = vmatprep.mubr.msk.f32.mxu1 %vm2429_vm0, %v3151_v0  ;;  %3168 = vst [vmem:[#allocation20_spill] sm:$0xff] %v2500_v2  ;;  %v103_v3 = vld [vmem:[%s3143_s0] sm:$0xff]  ;;  %v104_v4 = vld [vmem:[%s3143_s0 + $0x8] sm:$0xff]  ;;  %v105_v5 = vld [vmem:[%s3143_s0 + $0x10] sm:$0xff]  ;;  %vm385_vm1 = vcmask 1041409   ;;  %vm388_vm2 = vcmask 1042434  }
  0x4f   :  { %2226 = vmatpush3.msra.mxu1 %v2498_v1  ;;  %v2515_v6 = vld [vmem:[%s3143_s0 + $0x18] sm:$0xff]  ;;  %v167_v7 = vmax.f32 %v103_v3, 0.0  ;;  %v2521_v8 = vld [vmem:[%s3143_s0 + $0x20] sm:$0xff]  ;;  %v2526_v9 = vld [vmem:[%s3143_s0 + $0x28] sm:$0xff]  ;;  %v168_v11 = vmax.f32 %v104_v4, 0.0  ;;  %v169_v12 = vmax.f32 %v105_v5, 0.0 }
  0x50   :  { %2227 = vmatprep.subr.mxu1 %v3151_v0  ;;  %v111_v10 = vld [vmem:[%s3143_s0 + $0x40] sm:$0xff]  ;;  %v170_v13 = vmax.f32 %v2515_v6, 0.0  ;;  %v112_v14 = vld [vmem:[%s3143_s0 + $0x48] sm:$0xff]  ;;  %v113_v15 = vld [vmem:[%s3143_s0 + $0x50] sm:$0xff]  ;;  %v171_v17 = vmax.f32 %v2521_v8, 0.0  ;;  %vm391_vm3 = vcmask 1043459  }
  0x51   :  { %2228 = vmatpush3.msra.mxu1 %v2500_v2  ;;  %v2542_v16 = vld [vmem:[%s3143_s0 + $0x58] sm:$0xff]  ;;  %v175_v19 = vmax.f32 %v111_v10, 0.0  ;;  %v2550_v20 = vld [vmem:[%s3143_s0 + $0x60] sm:$0xff]  ;;  %v2555_v21 = vld [vmem:[%s3143_s0 + $0x68] sm:$0xff]  ;;  %v176_v23 = vmax.f32 %v112_v14, 0.0  ;;  %v177_v24 = vmax.f32 %v113_v15, 0.0  ;;  %v231_v26 = vadd.f32 %v168_v11, %v167_v7 }
  0x52   :  { %2232 = vmatprep.subr.mxu1 %v3151_v0  ;;  %v119_v22 = vld [vmem:[%s3143_s0 + $0x80] sm:$0xff]  ;;  %v3165_v25 = vmax.f32 %v2542_v16, 0.0  ;;  %v120_v27 = vld [vmem:[%s3143_s0 + $0x88] sm:$0xff]  ;;  %v121_v28 = vld [vmem:[%s3143_s0 + $0x90] sm:$0xff]  ;;  %v3164_v30 = vmax.f32 %v2550_v20, 0.0  ;;  %v2578_v33 = vadd.f32 %v171_v17, %v170_v13  ;;  %vm394_vm4 = vcmask 1044484  }
  0x53   :  { %v2570_v29 = vld [vmem:[%s3143_s0 + $0x98] sm:$0xff]  ;;  %v183_v32 = vmax.f32 %v119_v22, 0.0  ;;  %v2583_v34 = vld [vmem:[%s3143_s0 + $0xa0] sm:$0xff]  ;;  %v2588_v35 = vld [vmem:[%s3143_s0 + $0xa8] sm:$0xff]  ;;  %v184_v37 = vmax.f32 %v120_v27, 0.0  ;;  %v185_v38 = vmax.f32 %v121_v28, 0.0  ;;  %v232_v40 = vadd.f32 %v176_v23, %v175_v19 }
  0x54   :  { %v127_v36 = vld [vmem:[%s3143_s0 + $0xc0] sm:$0xff]  ;;  %v3163_v39 = vmax.f32 %v2570_v29, 0.0  ;;  %v128_v41 = vld [vmem:[%s3143_s0 + $0xc8] sm:$0xff]  ;;  %v129_v42 = vld [vmem:[%s3143_s0 + $0xd0] sm:$0xff]  ;;  %v3162_v44 = vmax.f32 %v2583_v34, 0.0  ;;  %v2607_v47 = vadd.f32 %v231_v26, %v169_v12  ;;  %vm397_vm5 = vcmask 1045509  }
  0x55   :  { %v2603_v43 = vld [vmem:[%s3143_s0 + $0xd8] sm:$0xff]  ;;  %v191_v46 = vmax.f32 %v127_v36, 0.0  ;;  %v2612_v48 = vld [vmem:[%s3143_s0 + $0xe0] sm:$0xff]  ;;  %v2617_v49 = vld [vmem:[%s3143_s0 + $0xe8] sm:$0xff]  ;;  %v192_v51 = vmax.f32 %v128_v41, 0.0  ;;  %v193_v52 = vmax.f32 %v129_v42, 0.0  ;;  %v233_v54 = vadd.f32 %v184_v37, %v183_v32 }
  0x56   :  { %v135_v50 = vld [vmem:[%s3143_s0 + $0x100] sm:$0xff]  ;;  %v3161_v53 = vmax.f32 %v2603_v43, 0.0  ;;  %v136_v55 = vld [vmem:[%s3143_s0 + $0x108] sm:$0xff]  ;;  %v137_v56 = vld [vmem:[%s3143_s0 + $0x110] sm:$0xff]  ;;  %v3160_v58 = vmax.f32 %v2612_v48, 0.0  ;;  %v240_v61 = vadd.f32 %v232_v40, %v177_v24  ;;  %vm400_vm6 = vcmask 1046534  }
  0x57   :  { %v2632_v57 = vld [vmem:[%s3143_s0 + $0x118] sm:$0xff]  ;;  %v199_v60 = vmax.f32 %v135_v50, 0.0  ;;  %v2639_v62 = vld [vmem:[%s3143_s0 + $0x120] sm:$0xff]  ;;  %v2644_v63 = vld [vmem:[%s3143_s0 + $0x128] sm:$0xff]  ;;  %v200_v4 = vmax.f32 %v136_v55, 0.0  ;;  %v201_v5 = vmax.f32 %v137_v56, 0.0  ;;  %v234_v10 = vadd.f32 %v192_v51, %v191_v46 }
  0x58   :  { %v143_v3 = vld [vmem:[%s3143_s0 + $0x140] sm:$0xff]  ;;  %v3159_v7 = vmax.f32 %v2632_v57, 0.0  ;;  %v144_v11 = vld [vmem:[%s3143_s0 + $0x148] sm:$0xff]  ;;  %v145_v12 = vld [vmem:[%s3143_s0 + $0x150] sm:$0xff]  ;;  %v3158_v15 = vmax.f32 %v2639_v62, 0.0  ;;  %v241_v23 = vadd.f32 %v233_v54, %v185_v38  ;;  %vm403_vm7 = vcmask 1047559  }
  0x59   :  { %v2659_v14 = vld [vmem:[%s3143_s0 + $0x158] sm:$0xff]  ;;  %v207_v22 = vmax.f32 %v143_v3, 0.0  ;;  %v2666_v24 = vld [vmem:[%s3143_s0 + $0x160] sm:$0xff]  ;;  %v2671_v26 = vld [vmem:[%s3143_s0 + $0x168] sm:$0xff]  ;;  %v208_v28 = vmax.f32 %v144_v11, 0.0  ;;  %v209_v32 = vmax.f32 %v145_v12, 0.0  ;;  %v235_v37 = vadd.f32 %v200_v4, %v199_v60 }
  0x5a   :  { %v151_v27 = vld [vmem:[%s3143_s0 + $0x180] sm:$0xff]  ;;  %v3157_v36 = vmax.f32 %v2659_v14, 0.0  ;;  %v152_v38 = vld [vmem:[%s3143_s0 + $0x188] sm:$0xff]  ;;  %v153_v40 = vld [vmem:[%s3143_s0 + $0x190] sm:$0xff]  ;;  %v3156_v42 = vmax.f32 %v2666_v24, 0.0  ;;  %v242_v51 = vadd.f32 %v234_v10, %v193_v52  ;;  %vm405_vm8 = vcmask 130048  }
  0x5b   :  { %v2686_v41 = vld [vmem:[%s3143_s0 + $0x198] sm:$0xff]  ;;  %v215_v50 = vmax.f32 %v151_v27, 0.0  ;;  %v2693_v54 = vld [vmem:[%s3143_s0 + $0x1a0] sm:$0xff]  ;;  %v2698_v55 = vld [vmem:[%s3143_s0 + $0x1a8] sm:$0xff]  ;;  %v216_v60 = vmax.f32 %v152_v38, 0.0  ;;  %v217_v3 = vmax.f32 %v153_v40, 0.0  ;;  %v236_v11 = vadd.f32 %v208_v28, %v207_v22 }
  0x5c   :  { %v159_v56 = vld [vmem:[%s3143_s0 + $0x1c0] sm:$0xff]  ;;  %v3155_v4 = vmax.f32 %v2686_v41, 0.0  ;;  %v160_v52 = vld [vmem:[%s3143_s0 + $0x1c8] sm:$0xff]  ;;  %v161_v10 = vld [vmem:[%s3143_s0 + $0x1d0] sm:$0xff]  ;;  %v243_v0 = vadd.f32 %v235_v37, %v201_v5  ;;  %v247_v37 = vadd.f32 %v2607_v47, %v170_v13  ;;  %v248_v27 = vadd.f32 %v240_v61, %v3165_v25 }
  0x5d   :  { %v2713_v12 = vld [vmem:[%s3143_s0 + $0x1d8] sm:$0xff]  ;;  %v223_v40 = vmax.f32 %v159_v56, 0.0  ;;  %v2720_v22 = vld [vmem:[%s3143_s0 + $0x1e0] sm:$0xff]  ;;  %v2725_v28 = vld [vmem:[%s3143_s0 + $0x1e8] sm:$0xff]  ;;  %v224_v46 = vmax.f32 %v160_v52, 0.0  ;;  %v225_v19 = vmax.f32 %v161_v10, 0.0  ;;  %v237_v45 = vadd.f32 %v216_v60, %v215_v50 }
  0x5e   :  { %v3153_v59 = vmax.f32 %v2713_v12, 0.0  ;;  %v3154_v31 = vmax.f32 %v2720_v22, 0.0  ;;  %v244_v5 = vadd.f32 %v236_v11, %v209_v32  ;;  %v249_v52 = vadd.f32 %v241_v23, %v3163_v39  ;;  %v1010_v11 = vld [vmem:[#allocation8 + $0x2d8] sm:$0xff]  ;;  %v1009_v10 = vld [vmem:[#allocation8 + $0x2d0] sm:$0xff] }
  0x5f   :  { %v238_v38 = vadd.f32 %v224_v46, %v223_v40  ;;  %v245_v18 = vadd.f32 %v237_v45, %v217_v3  ;;  %v250_v50 = vadd.f32 %v242_v51, %v3161_v53  ;;  %v251_v60 = vadd.f32 %v243_v0, %v3159_v7  ;;  %1335 = vmatprep.subr.mxu0 %v1010_v11  ;;  %v986_v7 = vld [vmem:[#allocation8 + $0x218] sm:$0xff]  ;;  %v985_v39 = vld [vmem:[#allocation8 + $0x210] sm:$0xff] }
  0x60   :  { %v252_v32 = vadd.f32 %v244_v5, %v3157_v36  ;;  %v2745_v6 = vadd.f32 %v247_v37, %v171_v17  ;;  %v2751_v47 = vadd.f32 %v248_v27, %v3164_v30  ;;  %v2755_v61 = vadd.f32 %v249_v52, %v3162_v44  ;;  %v1004_v27 = vld [vmem:[#allocation8 + $0x2a8] sm:$0xff]  ;;  %v1003_v52 = vld [vmem:[#allocation8 + $0x2a0] sm:$0xff]  ;;  %1336 = vmatpush1.msra.mxu0 %v1009_v10 }
  0x61   :  { %v246_v13 = vadd.f32 %v238_v38, %v225_v19  ;;  %v253_v45 = vadd.f32 %v245_v18, %v3155_v4  ;;  %v2759_v0 = vadd.f32 %v250_v50, %v3160_v58  ;;  %v2763_v8 = vadd.f32 %v251_v60, %v3158_v15  ;;  %1337 = vmatprep.subr.mxu0 %v1004_v27  ;;  %v992_v10 = vld [vmem:[#allocation8 + $0x248] sm:$0xff]  ;;  %v991_v27 = vld [vmem:[#allocation8 + $0x240] sm:$0xff] }
  0x62   :  { %v2767_v17 = vadd.f32 %v252_v32, %v3156_v42  ;;  %v271_v18 = vrot.slane %v2745_v6, 1  ;;  %v3169_v23 = vmax.f32 %v2693_v54, 0.0  ;;  %v272_v51 = vrot.slane %v2751_v47, 1  ;;  %1338 = vmatpush1.msra.mxu0 %v1003_v52 }
  0x63   :  { %v254_v19 = vadd.f32 %v246_v13, %v3153_v59  ;;  %v273_v3 = vrot.slane %v2755_v61, 1  ;;  %v274_v38 = vrot.slane %v2759_v0, 1  ;;  %v275_v40 = vrot.slane %v2763_v8, 1  ;;  %v997_v59 = vld [vmem:[#allocation8 + $0x270] sm:$0xff] }
  0x64   :  { %v2774_v46 = vadd.f32 %v253_v45, %v3169_v23  ;;  %v276_v5 = vrot.slane %v2767_v17, 1  ;;  %v287_v37 = vadd.f32 %v271_v18, %v2745_v6  ;;  %v288_v32 = vadd.f32 %v272_v51, %v2751_v47  ;;  %v998_v45 = vld [vmem:[#allocation8 + $0x278] sm:$0xff] }
  0x65   :  { %v2784_v50 = vadd.f32 %v254_v19, %v3154_v31  ;;  %v289_v13 = vadd.f32 %v273_v3, %v2755_v61  ;;  %v290_v23 = vadd.f32 %v274_v38, %v2759_v0  ;;  %v291_v56 = vadd.f32 %v275_v40, %v2763_v8  ;;  %1339 = vmatprep.subr.mxu0 %v998_v45 }
  0x66   :  { %v277_v60 = vrot.slane %v2774_v46, 1  ;;  %v292_v18 = vadd.f32 %v276_v5, %v2767_v17  ;;  %v295_v11 = vrot.slane %v2745_v6, 2  ;;  %v296_v51 = vrot.slane %v2751_v47, 2  ;;  %1340 = vmatpush1.msra.mxu0 %v997_v59 }
  0x67   :  { %v278_v19 = vrot.slane %v2784_v50, 1  ;;  %v297_v3 = vrot.slane %v2755_v61, 2  ;;  %v298_v38 = vrot.slane %v2759_v0, 2  ;;  %v299_v40 = vrot.slane %v2763_v8, 2  ;;  %1341 = vmatprep.subr.mxu0 %v992_v10 }
  0x68   :  { %v293_v31 = vadd.f32 %v277_v60, %v2774_v46  ;;  %v300_v5 = vrot.slane %v2767_v17, 2  ;;  %v301_v4 = vrot.slane %v2774_v46, 2  ;;  %v302_v60 = vrot.slane %v2784_v50, 2  ;;  %1342 = vmatpush1.msra.mxu0 %v991_v27 }
  0x69   :  { %v294_v42 = vadd.f32 %v278_v19, %v2784_v50  ;;  %v311_v36 = vadd.f32 %v295_v11, %v287_v37  ;;  %v312_v15 = vadd.f32 %v296_v51, %v288_v32  ;;  %v313_v52 = vadd.f32 %v297_v3, %v289_v13  ;;  %v980_v19 = vld [vmem:[#allocation8 + $0x1e8] sm:$0xff]  ;;  %1343 = vmatprep.subr.mxu0 %v986_v7  ;;  %v979_v13 = vld [vmem:[#allocation8 + $0x1e0] sm:$0xff] }
  0x6a   :  { %v314_v58 = vadd.f32 %v298_v38, %v290_v23  ;;  %v315_v53 = vadd.f32 %v299_v40, %v291_v56  ;;  %v316_v44 = vadd.f32 %v300_v5, %v292_v18  ;;  %v317_v30 = vadd.f32 %v301_v4, %v293_v31  ;;  %1344 = vmatpush1.msra.mxu0 %v985_v39  ;;  %v974_v18 = vld [vmem:[#allocation8 + $0x1b8] sm:$0xff]  ;;  %v973_v38 = vld [vmem:[#allocation8 + $0x1b0] sm:$0xff] }
  0x6b   :  { %v318_v25 = vadd.f32 %v302_v60, %v294_v42  ;;  %v319_v45 = vrot.slane %v2745_v6, 3  ;;  %v320_v2 = vrot.slane %v2751_v47, 3  ;;  %v321_v37 = vrot.slane %v2755_v61, 3  ;;  %1345 = vmatprep.subr.mxu0 %v980_v19  ;;  %v961_v60 = vld [vmem:[#allocation8 + $0x150] sm:$0xff]  ;;  %v956_v19 = vld [vmem:[#allocation8 + $0x128] sm:$0xff] }
  0x6c   :  { %v322_v59 = vrot.slane %v2759_v0, 3  ;;  %v323_v32 = vrot.slane %v2763_v8, 3  ;;  %v324_v56 = vrot.slane %v2767_v17, 3  ;;  %v325_v31 = vrot.slane %v2774_v46, 3  ;;  %1346 = vmatpush1.msra.mxu0 %v979_v13  ;;  %v955_v13 = vld [vmem:[#allocation8 + $0x120] sm:$0xff] }
  0x6d   :  { %v326_v42 = vrot.slane %v2784_v50, 3  ;;  %v335_v4 = vadd.f32 %v319_v45, %v311_v36  ;;  %v336_v23 = vadd.f32 %v320_v2, %v312_v15  ;;  %v337_v11 = vadd.f32 %v321_v37, %v313_v52  ;;  %v968_v36 = vld [vmem:[#allocation8 + $0x188] sm:$0xff]  ;;  %1347 = vmatprep.subr.mxu0 %v974_v18 }
  0x6e   :  { %v338_v51 = vadd.f32 %v322_v59, %v314_v58  ;;  %v339_v3 = vadd.f32 %v323_v32, %v315_v53  ;;  %v340_v10 = vadd.f32 %v324_v56, %v316_v44  ;;  %v341_v40 = vadd.f32 %v325_v31, %v317_v30  ;;  %v967_v53 = vld [vmem:[#allocation8 + $0x180] sm:$0xff]  ;;  %1348 = vmatpush1.msra.mxu0 %v973_v38 }
  0x6f   :  { %v342_v5 = vadd.f32 %v326_v42, %v318_v25  ;;  %v343_v7 = vrot.slane %v2745_v6, 4  ;;  %v344_v27 = vrot.slane %v2751_v47, 4  ;;  %v345_v2 = vrot.slane %v2755_v61, 4  ;;  %v962_v47 = vld [vmem:[#allocation8 + $0x158] sm:$0xff]  ;;  %1349 = vmatprep.subr.mxu0 %v968_v36 }
  0x70   :  { %v346_v39 = vrot.slane %v2759_v0, 4  ;;  %v347_v58 = vrot.slane %v2763_v8, 4  ;;  %v348_v44 = vrot.slane %v2767_v17, 4  ;;  %v349_v25 = vrot.slane %v2774_v46, 4  ;;  %1350 = vmatpush1.msra.mxu0 %v967_v53 }
  0x71   :  { %v350_v30 = vrot.slane %v2784_v50, 4  ;;  %v2819_v15 = vadd.f32 %v343_v7, %v335_v4  ;;  %v2821_v6 = vadd.f32 %v344_v27, %v336_v23  ;;  %v2823_v61 = vadd.f32 %v345_v2, %v337_v11  ;;  %1351 = vmatprep.subr.mxu0 %v962_v47  ;;  %v949_v2 = vld [vmem:[#allocation8 + $0xf0] sm:$0xff]  ;;  %v2897_v47 = vld [vmem:[%s3143_s0 + $0x38] sm:$0xff] }
  0x72   :  { %v2825_v0 = vadd.f32 %v346_v39, %v338_v51  ;;  %v2827_v8 = vadd.f32 %v347_v58, %v339_v3  ;;  %v2829_v17 = vadd.f32 %v348_v44, %v340_v10  ;;  %v2831_v46 = vadd.f32 %v349_v25, %v341_v40  ;;  %1352 = vmatpush1.msra.mxu0 %v961_v60  ;;  %v950_v51 = vld [vmem:[#allocation8 + $0xf8] sm:$0xff] }
  0x73   :  { %v2833_v50 = vadd.f32 %v350_v30, %v342_v5  ;;  %v384_v52 = vrot.slane %v2821_v6, 7  ;;  %v489_v45 = vrot.slane %v2819_v15, 3  ;;  %v387_v37 = vrot.slane %v2823_v61, 6  ;;  %1353 = vmatprep.subr.mxu0 %v956_v19  ;;  %v2878_v25 = vld [vmem:[%s3143_s0 + $0x30] sm:$0xff] }
  0x74   :  { %v390_v59 = vrot.slane %v2825_v0, 5  ;;  %v393_v32 = vrot.slane %v2827_v8, 4  ;;  %v396_v56 = vrot.slane %v2829_v17, 3  ;;  %v399_v42 = vrot.slane %v2831_v46, 2  ;;  %1354 = vmatpush1.msra.mxu0 %v955_v13 }
  0x75   :  { %v386_v31 = vsel %vm385_vm1, %v384_v52, %v2819_v15  ;;  %v402_v4 = vrot.slane %v2833_v50, 1  ;;  %v3170_v23 = vmax.f32 %v2542_v16, 0.0  ;;  %v3171_v18 = vmax.f32 %v2550_v20, 0.0  ;;  %1355 = vmatprep.subr.mxu0 %v950_v51  ;;  %v2945_v51 = vld [vmem:[%s3143_s0 + $0xf0] sm:$0xff] }
  0x76   :  { %v389_v3 = vsel %vm388_vm2, %v387_v37, %v386_v31  ;;  %v3172_v10 = vmax.f32 %v2570_v29, 0.0  ;;  %v3173_v38 = vmax.f32 %v2583_v34, 0.0  ;;  %v3174_v5 = vmax.f32 %v2603_v43, 0.0  ;;  %1356 = vmatpush1.msra.mxu0 %v949_v2 }
  0x77   :  { %v578_v11 = vadd.f32 %v3171_v18, %v3170_v23  ;;  %v3175_v7 = vmax.f32 %v2612_v48, 0.0  ;;  %v3176_v36 = vmax.f32 %v2632_v57, 0.0  ;;  %v3177_v16 = vmax.f32 %v2639_v62, 0.0 }
  0x78   :  { %v579_v40 = vadd.f32 %v3173_v38, %v3172_v10  ;;  %v392_v39 = vsel %vm391_vm3, %v390_v59, %v389_v3  ;;  %v3178_v58 = vmax.f32 %v2659_v14, 0.0  ;;  %v3179_v29 = vmax.f32 %v2666_v24, 0.0  ;;  %v944_v14 = vld [vmem:[#allocation8 + $0xc8] sm:$0xff]  ;;  %v141_v10 = vld [vmem:[%s3143_s0 + $0x130] sm:$0xff] }
  0x79   :  { %v580_v27 = vadd.f32 %v3175_v7, %v3174_v5  ;;  %v581_v20 = vadd.f32 %v3177_v16, %v3176_v36  ;;  %v3180_v44 = vmax.f32 %v2686_v41, 0.0  ;;  %v3181_v43 = vmax.f32 %v2693_v54, 0.0  ;;  %1357 = vmatprep.subr.mxu0 %v944_v14  ;;  %v2962_v38 = vld [vmem:[%s3143_s0 + $0x138] sm:$0xff] }
  0x7a   :  { %v582_v34 = vadd.f32 %v3179_v29, %v3178_v58  ;;  %v3182_v53 = vmax.f32 %v2713_v12, 0.0  ;;  %v3183_v57 = vmax.f32 %v2720_v22, 0.0  ;;  %v395_v24 = vsel %vm394_vm4, %v393_v32, %v392_v39  ;;  %v2920_v32 = vld [vmem:[%s3143_s0 + $0x78] sm:$0xff]  ;;  %v165_v29 = vld [vmem:[%s3143_s0 + $0x1f0] sm:$0xff] }
  0x7b   :  { %v583_v48 = vadd.f32 %v3181_v43, %v3180_v44  ;;  %v3184_v30 = vmax.f32 %v2526_v9, 0.0  ;;  %v3185_v54 = vmax.f32 %v2555_v21, 0.0  ;;  %v3186_v22 = vmax.f32 %v2588_v35, 0.0  ;;  %v2902_v9 = vld [vmem:[%s3143_s0 + $0x70] sm:$0xff]  ;;  %v150_v5 = vld [vmem:[%s3143_s0 + $0x178] sm:$0xff] }
  0x7c   :  { %v584_v62 = vadd.f32 %v3183_v57, %v3182_v53  ;;  %v398_v21 = vsel %vm397_vm5, %v396_v56, %v395_v24  ;;  %v3187_v60 = vmax.f32 %v2617_v49, 0.0  ;;  %v3188_v35 = vmax.f32 %v2644_v63, 0.0  ;;  %v2925_v56 = vld [vmem:[%s3143_s0 + $0xb0] sm:$0xff]  ;;  %v3193_v57 = vld [vmem:[#allocation20_spill] sm:$0xff] }
  0x7d   :  { %v2884_v41 = vadd.f32 %v2578_v33, %v3184_v30  ;;  %v2888_v12 = vadd.f32 %v578_v11, %v3185_v54  ;;  %v2892_v15 = vadd.f32 %v579_v40, %v3186_v22  ;;  %v943_v33 = vld [vmem:[#allocation8 + $0xc0] sm:$0xff]  ;;  %v3189_v37 = vmax.f32 %v2671_v26, 0.0  ;;  %v938_v49 = vld [vmem:[#allocation8 + $0x98] sm:$0xff]  ;;  %v937_v40 = vld [vmem:[#allocation8 + $0x90] sm:$0xff] }
  0x7e   :  { %v2907_v52 = vadd.f32 %v580_v27, %v3187_v60  ;;  %v2911_v19 = vadd.f32 %v581_v20, %v3188_v35  ;;  %v401_v63 = vsel %vm400_vm6, %v399_v42, %v398_v21  ;;  %v3190_v13 = vmax.f32 %v2698_v55, 0.0  ;;  %v2940_v11 = vld [vmem:[%s3143_s0 + $0xb8] sm:$0xff]  ;;  %1358 = vmatpush1.msra.mxu0 %v943_v33  ;;  %v926_v53 = vld [vmem:[#allocation8 + $0x38] sm:$0xff]  ;;  %v925_v24 = vld [vmem:[#allocation8 + $0x30] sm:$0xff] }
  0x7f   :  { %v2915_v59 = vadd.f32 %v582_v34, %v3189_v37  ;;  %v3191_v26 = vmax.f32 %v2725_v28, 0.0  ;;  %v490_v18 = vrot.slane %v2821_v6, 2  ;;  %v2950_v55 = vld [vmem:[%s3143_s0 + $0xf8] sm:$0xff]  ;;  %v404_v28 = vsel %vm403_vm7, %v402_v4, %v401_v63  ;;  %1359 = vmatprep.subr.mxu0 %v938_v49 }
  0x80   :  { %v2930_v31 = vadd.f32 %v583_v48, %v3190_v13  ;;  %v492_v6 = vrot.slane %v2823_v61, 1  ;;  %v495_v42 = vrot.slane %v2827_v8, 7  ;;  %v497_v3 = vrot.slane %v2829_v17, 6  ;;  %2230 = vmatmul.mubr.msk.f32.vlgmr.msra.gmra.mxu1 %vm405_vm8, %v404_v28  ;;  %v149_v17 = vld [vmem:[%s3143_s0 + $0x170] sm:$0xff]  ;;  %v932_v27 = vld [vmem:[#allocation8 + $0x68] sm:$0xff]  ;;  %1360 = vmatpush1.msra.mxu0 %v937_v40 }
  0x81   :  { %v2934_v23 = vadd.f32 %v584_v62, %v3191_v26  ;;  %v491_v4 = vsel %vm385_vm1, %v490_v18, %v489_v45  ;;  %v499_v61 = vrot.slane %v2831_v46, 5  ;;  %v501_v8 = vrot.slane %v2833_v50, 4  ;;  %2233 = vmatpush3.msra.mxu1 %v2498_v1  ;;  %v157_v50 = vld [vmem:[%s3143_s0 + $0x1b0] sm:$0xff]  ;;  %v158_v45 = vld [vmem:[%s3143_s0 + $0x1b8] sm:$0xff]  ;;  %1361 = vmatprep.subr.mxu0 %v932_v27 }
  0x82   :  { %v173_v7 = vmax.f32 %v2878_v25, 0.0  ;;  %v3192_v36 = vmov 0.0   ;;  %v493_v46 = vsel %vm388_vm2, %v492_v6, %v491_v4  ;;  %v174_v16 = vmax.f32 %v2897_v47, 0.0  ;;  %v931_v39 = vld [vmem:[#allocation8 + $0x60] sm:$0xff]  ;;  %v920_v18 = vld [vmem:[#allocation8 + $0x8] sm:$0xff]  ;;  %v1105_v6 = vld [vmem:[#allocation8 + $0x5d0] sm:$0xff] }
  0x83   :  { %2236 = vmatprep.mubr.msk.f32.mxu1 %vm2429_vm0, %v3192_v36  ;;  %v181_v20 = vmax.f32 %v2902_v9, 0.0  ;;  %v182_v2 = vmax.f32 %v2920_v32, 0.0  ;;  %2234 = vmatprep.subr.mxu1 %v3192_v36  ;;  %v494_v58 = vsel %vm391_vm3, %v2825_v0, %v493_v46  ;;  %v166_v34 = vld [vmem:[%s3143_s0 + $0x1f8] sm:$0xff]  ;;  %v189_v44 = vmax.f32 %v2925_v56, 0.0  ;;  %s2430_s0 = smov [#allocation14]  }
  0x84   :  { %v190_v43 = vmax.f32 %v2940_v11, 0.0  ;;  %v197_v48 = vmax.f32 %v2945_v51, 0.0  ;;  %2235 = vmatpush3.msra.mxu1 %v3193_v57  ;;  %v496_v0 = vsel %vm394_vm4, %v495_v42, %v494_v58  ;;  %v198_v62 = vmax.f32 %v2950_v55, 0.0  ;;  %1362 = vmatpush1.msra.mxu0 %v931_v39  ;;  %v919_v11 = vld [vmem:[#allocation8] sm:$0xff]  ;;  %v1100_v40 = vld [vmem:[#allocation8 + $0x5a8] sm:$0xff]  ;;  %v1093_v58 = vld [vmem:[#allocation8 + $0x570] sm:$0xff] }
  0x85   :  { %v205_v25 = vmax.f32 %v141_v10, 0.0  ;;  %v206_v14 = vmax.f32 %v2962_v38, 0.0  ;;  %2239 = vmatprep.subr.mxu1 %v3192_v36  ;;  %v498_v30 = vsel %vm397_vm5, %v497_v3, %v496_v0  ;;  %v213_v54 = vmax.f32 %v149_v17, 0.0  ;;  %1363 = vmatprep.subr.mxu0 %v926_v53  ;;  %s2087_s18 = sshll.u32 %s2430_s0, 4  ;;  %s2088_s18 = int_to_ptr.vmem [resolvable:$true] %s2087_s18 }
  0x86   :  { %v214_v22 = vmax.f32 %v150_v5, 0.0  ;;  %v221_v47 = vmax.f32 %v157_v50, 0.0  ;;  %v500_v9 = vsel %vm400_vm6, %v499_v61, %v498_v30  ;;  %v222_v33 = vmax.f32 %v158_v45, 0.0  ;;  %1364 = vmatpush1.msra.mxu0 %v925_v24  ;;  %v1099_v5 = vld [vmem:[#allocation8 + $0x5a0] sm:$0xff]  ;;  %v1094_v45 = vld [vmem:[#allocation8 + $0x578] sm:$0xff]  ;;  %s2388_s19 = scalar_lea.vmem %s2088_s18, 128  ;;  %p2393_p3 = scmp.lt.s32.totalorder %s2088_s18, %s2088_s18 }
  0x87   :  { %v229_v21 = vmax.f32 %v165_v29, 0.0  ;;  %v230_v60 = vmax.f32 %v166_v34, 0.0  ;;  %v502_v35 = vsel %vm403_vm7, %v501_v8, %v500_v9  ;;  %v593_v37 = vadd.f32 %v2884_v41, %v173_v7  ;;  %1365 = vmatprep.subr.mxu0 %v920_v18  ;;  %p2389_p2 = scmp.ne.s32.totalorder %s2088_s18, %s2388_s19  ;;  %p2394_p4 = scmp.lt.s32.totalorder %s2388_s19, %s2388_s19 }
  0x88   :  { %v594_v32 = vadd.f32 %v2888_v12, %v181_v20  ;;  %v595_v56 = vadd.f32 %v2892_v15, %v189_v44  ;;  %2237 = vmatmul.mubr.msk.f32.vlgmr.msra.gmra.mxu1 %vm405_vm8, %v502_v35  ;;  %v596_v49 = vadd.f32 %v2907_v52, %v197_v48  ;;  %v597_v63 = vadd.f32 %v2911_v19, %v205_v25  ;;  %v1088_v48 = vld [vmem:[#allocation8 + $0x548] sm:$0xff]  ;;  %v1087_v25 = vld [vmem:[#allocation8 + $0x540] sm:$0xff] }
  0x89   :  { %v598_v13 = vadd.f32 %v2915_v59, %v213_v54  ;;  %v599_v26 = vadd.f32 %v2930_v31, %v221_v47  ;;  %2240 = vmatpush3.msra.mxu1 %v2498_v1  ;;  %2243 = vmatprep.mubr.msk.f32.mxu1 %vm2429_vm0, %v3192_v36  ;;  %v600_v41 = vadd.f32 %v2934_v23, %v229_v21  ;;  %v1106_v1 = vld [vmem:[#allocation8 + $0x5d8] sm:$0xff]  ;;  %p2395_p5 = por %p2394_p4, %p2393_p3 }
  0x8a   :  { %v3020_v12 = vadd.f32 %v593_v37, %v174_v16  ;;  %v3022_v15 = vadd.f32 %v594_v32, %v182_v2  ;;  %2241 = vmatprep.subr.mxu1 %v3192_v36  ;;  %v3025_v52 = vadd.f32 %v595_v56, %v190_v43  ;;  %v3027_v19 = vadd.f32 %v596_v49, %v198_v62  ;;  %v1076_v49 = vld [vmem:[#allocation8 + $0x4e8] sm:$0xff] }
  0x8b   :  { %v3029_v59 = vadd.f32 %v597_v63, %v206_v14  ;;  %v3031_v31 = vadd.f32 %v598_v13, %v214_v22  ;;  %2242 = vmatpush3.msra.mxu1 %v3193_v57  ;;  %v3034_v51 = vadd.f32 %v599_v26, %v222_v33  ;;  %v3036_v23 = vadd.f32 %v600_v41, %v230_v60  ;;  %v1082_v22 = vld [vmem:[#allocation8 + $0x518] sm:$0xff]  ;;  %v1081_v60 = vld [vmem:[#allocation8 + $0x510] sm:$0xff]  ;;  %v1075_v41 = vld [vmem:[#allocation8 + $0x4e0] sm:$0xff]  ;;  %p2396_p6 = pnand %p2395_p5, %p2389_p2 }
  0x8c   :  { %v617_v55 = vrot.slane %v3020_v12, 1  ;;  %v618_v28 = vrot.slane %v3022_v15, 1  ;;  %2246 = vmatprep.subr.mxu1 %v3192_v36  ;;  %v619_v42 = vrot.slane %v3025_v52, 1  ;;  %v620_v3 = vrot.slane %v3027_v19, 1  ;;  %1366 = vmatpush1.msra.mxu0 %v919_v11 }
  0x8d   :  { %v621_v10 = vrot.slane %v3029_v59, 1  ;;  %v622_v38 = vrot.slane %v3031_v31, 1  ;;  %v623_v4 = vrot.slane %v3034_v51, 1  ;;  %v624_v61 = vrot.slane %v3036_v23, 1  ;;  %1367 = vmatprep.subr.mxu0 %v1106_v1 }
  0x8e   :  { %v633_v8 = vadd.f32 %v617_v55, %v3020_v12  ;;  %v634_v17 = vadd.f32 %v618_v28, %v3022_v15  ;;  %v635_v7 = vadd.f32 %v619_v42, %v3025_v52  ;;  %v636_v27 = vadd.f32 %v620_v3, %v3027_v19  ;;  %1368 = vmatpush2.msra.mxu0 %v1105_v6  ;;  %v1070_v6 = vld [vmem:[#allocation8 + $0x4b8] sm:$0xff] }
  0x8f   :  { %v637_v46 = vadd.f32 %v621_v10, %v3029_v59  ;;  %v638_v50 = vadd.f32 %v622_v38, %v3031_v31  ;;  %v639_v16 = vadd.f32 %v623_v4, %v3034_v51  ;;  %v640_v20 = vadd.f32 %v624_v61, %v3036_v23  ;;  %1369 = vmatprep.subr.mxu0 %v1100_v40  ;;  %v1069_v40 = vld [vmem:[#allocation8 + $0x4b0] sm:$0xff] }
  0x90   :  { %v641_v2 = vrot.slane %v3020_v12, 2  ;;  %v642_v39 = vrot.slane %v3022_v15, 2  ;;  %v643_v29 = vrot.slane %v3025_v52, 2  ;;  %v644_v34 = vrot.slane %v3027_v19, 2  ;;  %1370 = vmatpush2.msra.mxu0 %v1099_v5  ;;  %v1064_v5 = vld [vmem:[#allocation8 + $0x488] sm:$0xff] }
  0x91   :  { %v645_v44 = vrot.slane %v3029_v59, 2  ;;  %v646_v43 = vrot.slane %v3031_v31, 2  ;;  %v647_v53 = vrot.slane %v3034_v51, 2  ;;  %v648_v57 = vrot.slane %v3036_v23, 2  ;;  %1371 = vmatprep.subr.mxu0 %v1094_v45 }
  0x92   :  { %v657_v0 = vadd.f32 %v641_v2, %v633_v8  ;;  %v658_v62 = vadd.f32 %v642_v39, %v634_v17  ;;  %v659_v14 = vadd.f32 %v643_v29, %v635_v7  ;;  %v660_v24 = vadd.f32 %v644_v34, %v636_v27  ;;  %1372 = vmatpush2.msra.mxu0 %v1093_v58  ;;  %v1057_v39 = vld [vmem:[#allocation8 + $0x450] sm:$0xff] }
  0x93   :  { %v661_v30 = vadd.f32 %v645_v44, %v637_v46  ;;  %v662_v54 = vadd.f32 %v646_v43, %v638_v50  ;;  %v663_v47 = vadd.f32 %v647_v53, %v639_v16  ;;  %v664_v9 = vadd.f32 %v648_v57, %v640_v20  ;;  %1373 = vmatprep.subr.mxu0 %v1088_v48  ;;  %v1051_v48 = vld [vmem:[#allocation8 + $0x420] sm:$0xff] }
  0x94   :  { %v665_v33 = vrot.slane %v3020_v12, 3  ;;  %v666_v21 = vrot.slane %v3022_v15, 3  ;;  %v667_v35 = vrot.slane %v3025_v52, 3  ;;  %v668_v37 = vrot.slane %v3027_v19, 3  ;;  %1374 = vmatpush2.msra.mxu0 %v1087_v25  ;;  %v1046_v25 = vld [vmem:[#allocation8 + $0x3f8] sm:$0xff] }
  0x95   :  { %v669_v32 = vrot.slane %v3029_v59, 3  ;;  %v670_v56 = vrot.slane %v3031_v31, 3  ;;  %v671_v63 = vrot.slane %v3034_v51, 3  ;;  %v672_v13 = vrot.slane %v3036_v23, 3  ;;  %1375 = vmatprep.subr.mxu0 %v1082_v22  ;;  %v1045_v22 = vld [vmem:[#allocation8 + $0x3f0] sm:$0xff] }
  0x96   :  { %v681_v26 = vadd.f32 %v665_v33, %v657_v0  ;;  %v682_v18 = vadd.f32 %v666_v21, %v658_v62  ;;  %v683_v11 = vadd.f32 %v667_v35, %v659_v14  ;;  %v684_v1 = vadd.f32 %v668_v37, %v660_v24  ;;  %1376 = vmatpush2.msra.mxu0 %v1081_v60  ;;  %v1040_v21 = vld [vmem:[#allocation8 + $0x3c8] sm:$0xff] }
  0x97   :  { %v685_v55 = vadd.f32 %v669_v32, %v661_v30  ;;  %v686_v28 = vadd.f32 %v670_v56, %v662_v54  ;;  %v687_v42 = vadd.f32 %v671_v63, %v663_v47  ;;  %v688_v3 = vadd.f32 %v672_v13, %v664_v9  ;;  %1377 = vmatprep.subr.mxu0 %v1076_v49 }
  0x98   :  { %v689_v10 = vrot.slane %v3020_v12, 4  ;;  %v690_v38 = vrot.slane %v3022_v15, 4  ;;  %v691_v4 = vrot.slane %v3025_v52, 4  ;;  %v692_v61 = vrot.slane %v3027_v19, 4  ;;  %1378 = vmatpush2.msra.mxu0 %v1075_v41  ;;  %v1063_v15 = vld [vmem:[#allocation8 + $0x480] sm:$0xff]  ;;  %v1058_v19 = vld [vmem:[#allocation8 + $0x458] sm:$0xff] }
  0x99   :  { %v693_v8 = vrot.slane %v3029_v59, 4  ;;  %v694_v17 = vrot.slane %v3031_v31, 4  ;;  %v695_v7 = vrot.slane %v3034_v51, 4  ;;  %v696_v27 = vrot.slane %v3036_v23, 4  ;;  %1379 = vmatprep.subr.mxu0 %v1070_v6  ;;  %v1052_v23 = vld [vmem:[#allocation8 + $0x428] sm:$0xff]  ;;  %v1202_v41 = vld [vmem:[#allocation8 + $0x8d8] sm:$0xff] }
  0x9a   :  { %v705_v46 = vadd.f32 %v689_v10, %v681_v26  ;;  %v706_v12 = vadd.f32 %v690_v38, %v682_v18  ;;  %v707_v50 = vadd.f32 %v691_v4, %v683_v11  ;;  %v708_v45 = vadd.f32 %v692_v61, %v684_v1  ;;  %1380 = vmatpush2.msra.mxu0 %v1069_v40  ;;  %v2266_v26 = vld [vmem:[#allocation3 + $0x8] sm:$0xff]  ;;  %v2267_v1 = vld [vmem:[#allocation3] sm:$0xff]  ;;  %v1183_v10 = vld [vmem:[#allocation8 + $0x840] sm:$0xff] }
  0x9b   :  { %v709_v16 = vadd.f32 %v693_v8, %v685_v55  ;;  %v710_v52 = vadd.f32 %v694_v17, %v686_v28  ;;  %v711_v20 = vadd.f32 %v695_v7, %v687_v42  ;;  %v712_v59 = vadd.f32 %v696_v27, %v688_v3  ;;  %1381 = vmatprep.subr.mxu0 %v1064_v5  ;;  %v1201_v11 = vld [vmem:[#allocation8 + $0x8d0] sm:$0xff]  ;;  %v1196_v55 = vld [vmem:[#allocation8 + $0x8a8] sm:$0xff]  ;;  %v1195_v28 = vld [vmem:[#allocation8 + $0x8a0] sm:$0xff] }
  0x9c   :  { %v730_v2 = vrot.slane %v706_v12, 7  ;;  %v827_v31 = vrot.slane %v705_v46, 3  ;;  %v732_v58 = vrot.slane %v707_v50, 6  ;;  %v734_v51 = vrot.slane %v708_v45, 5  ;;  %1382 = vmatpush2.msra.mxu0 %v1063_v15  ;;  %v1190_v6 = vld [vmem:[#allocation8 + $0x878] sm:$0xff]  ;;  %v1189_v42 = vld [vmem:[#allocation8 + $0x870] sm:$0xff] }
  0x9d   :  { %v736_v29 = vrot.slane %v709_v16, 4  ;;  %v738_v44 = vrot.slane %v710_v52, 3  ;;  %v828_v43 = vrot.slane %v706_v12, 2  ;;  %1383 = vmatprep.subr.mxu0 %v1058_v19  ;;  %v740_v57 = vrot.slane %v711_v20, 2  ;;  %v1184_v3 = vld [vmem:[#allocation8 + $0x848] sm:$0xff]  ;;  %v1178_v38 = vld [vmem:[#allocation8 + $0x818] sm:$0xff] }
  0x9e   :  { %v731_v34 = vsel %vm385_vm1, %v730_v2, %v705_v46  ;;  %v830_v0 = vrot.slane %v707_v50, 1  ;;  %v833_v62 = vrot.slane %v709_v16, 7  ;;  %1384 = vmatpush2.msra.mxu0 %v1057_v39  ;;  %v742_v24 = vrot.slane %v712_v59, 1  ;;  %v1172_v40 = vld [vmem:[#allocation8 + $0x7e8] sm:$0xff]  ;;  %v1171_v4 = vld [vmem:[#allocation8 + $0x7e0] sm:$0xff]  ;;  %v1166_v61 = vld [vmem:[#allocation8 + $0x7b8] sm:$0xff] }
  0x9f   :  { %v733_v53 = vsel %vm388_vm2, %v732_v58, %v731_v34  ;;  %v829_v30 = vsel %vm385_vm1, %v828_v43, %v827_v31  ;;  %v835_v54 = vrot.slane %v710_v52, 6  ;;  %1385 = vmatprep.subr.mxu0 %v1052_v23  ;;  %v837_v33 = vrot.slane %v711_v20, 5  ;;  %v1165_v8 = vld [vmem:[#allocation8 + $0x7b0] sm:$0xff]  ;;  %v1160_v17 = vld [vmem:[#allocation8 + $0x788] sm:$0xff]  ;;  %v1159_v5 = vld [vmem:[#allocation8 + $0x780] sm:$0xff] }
  0xa0   :  { %v735_v14 = vsel %vm391_vm3, %v734_v51, %v733_v53  ;;  %v831_v9 = vsel %vm388_vm2, %v830_v0, %v829_v30  ;;  %1386 = vmatpush2.msra.mxu0 %v1051_v48  ;;  %v839_v37 = vrot.slane %v712_v59, 4  ;;  %v1154_v7 = vld [vmem:[#allocation8 + $0x758] sm:$0xff]  ;;  %v1153_v27 = vld [vmem:[#allocation8 + $0x750] sm:$0xff]  ;;  %v1148_v46 = vld [vmem:[#allocation8 + $0x728] sm:$0xff] }
  0xa1   :  { %v737_v47 = vsel %vm394_vm4, %v736_v29, %v735_v14  ;;  %v832_v35 = vsel %vm391_vm3, %v708_v45, %v831_v9  ;;  %1387 = vmatprep.subr.mxu0 %v1046_v25  ;;  %v1147_v12 = vld [vmem:[#allocation8 + $0x720] sm:$0xff]  ;;  %v1142_v15 = vld [vmem:[#allocation8 + $0x6f8] sm:$0xff]  ;;  %v1141_v50 = vld [vmem:[#allocation8 + $0x6f0] sm:$0xff] }
  0xa2   :  { %v739_v60 = vsel %vm397_vm5, %v738_v44, %v737_v47  ;;  %v834_v56 = vsel %vm394_vm4, %v833_v62, %v832_v35  ;;  %1388 = vmatpush2.msra.mxu0 %v1045_v22  ;;  %v1136_v45 = vld [vmem:[#allocation8 + $0x6c8] sm:$0xff]  ;;  %v1135_v16 = vld [vmem:[#allocation8 + $0x6c0] sm:$0xff]  ;;  %v1130_v52 = vld [vmem:[#allocation8 + $0x698] sm:$0xff] }
  0xa3   :  { %v741_v32 = vsel %vm400_vm6, %v740_v57, %v739_v60  ;;  %v836_v63 = vsel %vm397_vm5, %v835_v54, %v834_v56  ;;  %1389 = vmatprep.subr.mxu0 %v1040_v21  ;;  %v1129_v19 = vld [vmem:[#allocation8 + $0x690] sm:$0xff]  ;;  %v1124_v20 = vld [vmem:[#allocation8 + $0x668] sm:$0xff]  ;;  %v1123_v59 = vld [vmem:[#allocation8 + $0x660] sm:$0xff] }
  0xa4   :  { %v743_v49 = vsel %vm403_vm7, %v742_v24, %v741_v32  ;;  %v838_v13 = vsel %vm400_vm6, %v837_v33, %v836_v63  ;;  %v1118_v2 = vld [vmem:[#allocation8 + $0x638] sm:$0xff]  ;;  %v1117_v31 = vld [vmem:[#allocation8 + $0x630] sm:$0xff]  ;;  %v1112_v39 = vld [vmem:[#allocation8 + $0x608] sm:$0xff] }
  0xa5   :  { %2244 = vmatmul.mubr.msk.f32.vlgmr.msra.gmra.mxu1 %vm405_vm8, %v743_v49  ;;  %v840_v18 = vsel %vm403_vm7, %v839_v37, %v838_v13  ;;  %v1111_v58 = vld [vmem:[#allocation8 + $0x600] sm:$0xff]  ;;  %v1034_v29 = vld [vmem:[#allocation8 + $0x398] sm:$0xff]  ;;  %v1033_v34 = vld [vmem:[#allocation8 + $0x390] sm:$0xff] }
  0xa6   :  { %2247 = vmatpush3.msra.mxu1 %v2266_v26  ;;  %2250 = vmatprep.mubr.msk.f32.mxu1 %vm2429_vm0, %v3192_v36  ;;  %v1039_v51 = vld [vmem:[#allocation8 + $0x3c0] sm:$0xff]  ;;  %v1298_v23 = vld [vmem:[#allocation8 + $0xbd8] sm:$0xff]  ;;  %v1297_v44 = vld [vmem:[#allocation8 + $0xbd0] sm:$0xff] }
  0xa7   :  { %2248 = vmatprep.subr.mxu1 %v3192_v36  ;;  %v1177_v36 = vld [vmem:[#allocation8 + $0x810] sm:$0xff]  ;;  %1390 = vmatpush2.msra.mxu0 %v1039_v51  ;;  %v1028_v43 = vld [vmem:[#allocation8 + $0x368] sm:$0xff]  ;;  %v1291_v53 = vld [vmem:[#allocation8 + $0xba0] sm:$0xff] }
  0xa8   :  { %2249 = vmatpush3.msra.mxu1 %v2267_v1  ;;  %1391 = vmatprep.subr.mxu0 %v1034_v29  ;;  %v1292_v48 = vld [vmem:[#allocation8 + $0xba8] sm:$0xff]  ;;  %v1286_v57 = vld [vmem:[#allocation8 + $0xb78] sm:$0xff]  ;;  %v1285_v0 = vld [vmem:[#allocation8 + $0xb70] sm:$0xff] }
  0xa9   :  { %2251 = vmatmul.mubr.msk.f32.vlgmr.msra.gmra.mxu1 %vm405_vm8, %v840_v18  ;;  %1406 = vmatprep.subr.mxu1 %v1202_v41  ;;  %v1280_v62 = vld [vmem:[#allocation8 + $0xb48] sm:$0xff]  ;;  %v1027_v25 = vld [vmem:[#allocation8 + $0x360] sm:$0xff]  ;;  %v1022_v14 = vld [vmem:[#allocation8 + $0x338] sm:$0xff] }
  0xaa   :  { %1407 = vmatpush1.msra.mxu1 %v1201_v11  ;;  %1392 = vmatpush2.msra.mxu0 %v1033_v34  ;;  %v1279_v24 = vld [vmem:[#allocation8 + $0xb40] sm:$0xff]  ;;  %v1021_v30 = vld [vmem:[#allocation8 + $0x330] sm:$0xff]  ;;  %v1274_v54 = vld [vmem:[#allocation8 + $0xb18] sm:$0xff] }
  0xab   :  { %1408 = vmatprep.subr.mxu1 %v1196_v55  ;;  %1393 = vmatprep.subr.mxu0 %v1028_v43  ;;  %v1016_v22 = vld [vmem:[#allocation8 + $0x308] sm:$0xff]  ;;  %v1273_v47 = vld [vmem:[#allocation8 + $0xb10] sm:$0xff]  ;;  %v1267_v33 = vld [vmem:[#allocation8 + $0xae0] sm:$0xff] }
  0xac   :  { %1409 = vmatpush1.msra.mxu1 %v1195_v28  ;;  %1394 = vmatpush2.msra.mxu0 %v1027_v25  ;;  %v1268_v9 = vld [vmem:[#allocation8 + $0xae8] sm:$0xff]  ;;  %v1262_v21 = vld [vmem:[#allocation8 + $0xab8] sm:$0xff]  ;;  %v1261_v60 = vld [vmem:[#allocation8 + $0xab0] sm:$0xff] }
  0xad   :  { %1410 = vmatprep.subr.mxu1 %v1190_v6  ;;  %1395 = vmatprep.subr.mxu0 %v1022_v14  ;;  %v1256_v35 = vld [vmem:[#allocation8 + $0xa88] sm:$0xff]  ;;  %v1255_v37 = vld [vmem:[#allocation8 + $0xa80] sm:$0xff]  ;;  %v1250_v32 = vld [vmem:[#allocation8 + $0xa58] sm:$0xff] }
  0xae   :  { %1411 = vmatpush1.msra.mxu1 %v1189_v42  ;;  %1396 = vmatpush2.msra.mxu0 %v1021_v30  ;;  %v1249_v56 = vld [vmem:[#allocation8 + $0xa50] sm:$0xff]  ;;  %v1244_v49 = vld [vmem:[#allocation8 + $0xa28] sm:$0xff]  ;;  %v1243_v63 = vld [vmem:[#allocation8 + $0xa20] sm:$0xff] }
  0xaf   :  { %1412 = vmatprep.subr.mxu1 %v1184_v3  ;;  %1397 = vmatprep.subr.mxu0 %v1016_v22  ;;  %v1238_v13 = vld [vmem:[#allocation8 + $0x9f8] sm:$0xff]  ;;  %v1237_v26 = vld [vmem:[#allocation8 + $0x9f0] sm:$0xff]  ;;  %v1232_v18 = vld [vmem:[#allocation8 + $0x9c8] sm:$0xff] }
  0xb0   :  { %1413 = vmatpush1.msra.mxu1 %v1183_v10  ;;  %v1015_v41 = vld [vmem:[#allocation8 + $0x300] sm:$0xff]  ;;  %v1226_v1 = vld [vmem:[#allocation8 + $0x998] sm:$0xff]  ;;  %v1012_v55 = vld [vmem:[#allocation8 + $0x2e8] sm:$0xff] }
  0xb1   :  { %1414 = vmatprep.subr.mxu1 %v1178_v38  ;;  %v1231_v11 = vld [vmem:[#allocation8 + $0x9c0] sm:$0xff]  ;;  %1398 = vmatpush2.msra.mxu0 %v1015_v41  ;;  %v1225_v28 = vld [vmem:[#allocation8 + $0x990] sm:$0xff]  ;;  %v1220_v6 = vld [vmem:[#allocation8 + $0x968] sm:$0xff] }
  0xb2   :  { %1415 = vmatpush1.msra.mxu1 %v1177_v36  ;;  %1477 = vmatprep.subr.mxu0 %v1012_v55  ;;  %v1219_v42 = vld [vmem:[#allocation8 + $0x960] sm:$0xff]  ;;  %v1214_v3 = vld [vmem:[#allocation8 + $0x938] sm:$0xff]  ;;  %v1213_v10 = vld [vmem:[#allocation8 + $0x930] sm:$0xff] }
  0xb3   :  { %1416 = vmatprep.subr.mxu1 %v1172_v40  ;;  %v1208_v38 = vld [vmem:[#allocation8 + $0x908] sm:$0xff]  ;;  %v1207_v36 = vld [vmem:[#allocation8 + $0x900] sm:$0xff]  ;;  %v970_v29 = vld [vmem:[#allocation8 + $0x198] sm:$0xff] }
  0xb4   :  { %1417 = vmatpush1.msra.mxu1 %v1171_v4  ;;  %v1204_v40 = vld [vmem:[#allocation8 + $0x8e8] sm:$0xff]  ;;  %v975_v51 = vld [vmem:[#allocation8 + $0x1c0] sm:$0xff]  ;;  %v958_v43 = vld [vmem:[#allocation8 + $0x138] sm:$0xff] }
  0xb5   :  { %1418 = vmatprep.subr.mxu1 %v1166_v61  ;;  %v964_v34 = vld [vmem:[#allocation8 + $0x168] sm:$0xff]  ;;  %v934_v30 = vld [vmem:[#allocation8 + $0x78] sm:$0xff]  ;;  %v933_v22 = vld [vmem:[#allocation8 + $0x70] sm:$0xff] }
  0xb6   :  { %1419 = vmatpush1.msra.mxu1 %v1165_v8  ;;  %v3098_v8 = vld [vmem:[#allocation6] ss:$0 sm:$0xff]  ;;  %v940_v25 = vld [vmem:[#allocation8 + $0xa8] sm:$0xff]  ;;  %v1197_v41 = vld [vmem:[#allocation8 + $0x8b0] sm:$0xff] }
  0xb7   :  { %1420 = vmatprep.subr.mxu1 %v1160_v17  ;;  %v1101_v55 = vld [vmem:[#allocation8 + $0x5b0] sm:$0xff] }
  0xb8   :  { %1421 = vmatpush1.msra.mxu1 %v1159_v5 }
  0xb9   :  { %1422 = vmatprep.subr.mxu1 %v1154_v7 }
  0xba   :  { %1423 = vmatpush1.msra.mxu1 %v1153_v27 }
  0xbb   :  { %1424 = vmatprep.subr.mxu1 %v1148_v46 }
  0xbc   :  { %1425 = vmatpush1.msra.mxu1 %v1147_v12 }
  0xbd   :  { %1426 = vmatprep.subr.mxu1 %v1142_v15  ;;  %v1011_v15 = vld [vmem:[#allocation8 + $0x2e0] sm:$0xff] }
  0xbe   :  { %1427 = vmatpush1.msra.mxu1 %v1141_v50  ;;  %v1006_v50 = vld [vmem:[#allocation8 + $0x2b8] sm:$0xff] }
  0xbf   :  { %1428 = vmatprep.subr.mxu1 %v1136_v45  ;;  %v1005_v45 = vld [vmem:[#allocation8 + $0x2b0] sm:$0xff] }
  0xc0   :  { %1429 = vmatpush1.msra.mxu1 %v1135_v16  ;;  %v1000_v16 = vld [vmem:[#allocation8 + $0x288] sm:$0xff] }
  0xc1   :  { %1430 = vmatprep.subr.mxu1 %v1130_v52  ;;  %v999_v52 = vld [vmem:[#allocation8 + $0x280] sm:$0xff] }
  0xc2   :  { %1431 = vmatpush1.msra.mxu1 %v1129_v19  ;;  %v994_v19 = vld [vmem:[#allocation8 + $0x258] sm:$0xff] }
  0xc3   :  { %1432 = vmatprep.subr.mxu1 %v1124_v20  ;;  %v993_v20 = vld [vmem:[#allocation8 + $0x250] sm:$0xff] }
  0xc4   :  { %1433 = vmatpush1.msra.mxu1 %v1123_v59  ;;  %v988_v59 = vld [vmem:[#allocation8 + $0x228] sm:$0xff] }
  0xc5   :  { %1434 = vmatprep.subr.mxu1 %v1118_v2  ;;  %v987_v2 = vld [vmem:[#allocation8 + $0x220] sm:$0xff] }
  0xc6   :  { %1435 = vmatpush1.msra.mxu1 %v1117_v31  ;;  %v982_v31 = vld [vmem:[#allocation8 + $0x1f8] sm:$0xff] }
  0xc7   :  { %1436 = vmatprep.subr.mxu1 %v1112_v39  ;;  %v981_v39 = vld [vmem:[#allocation8 + $0x1f0] sm:$0xff] }
  0xc8   :  { %1437 = vmatpush1.msra.mxu1 %v1111_v58  ;;  %v976_v58 = vld [vmem:[#allocation8 + $0x1c8] sm:$0xff] }
  0xc9   :  { %1438 = vmatprep.subr.mxu1 %v1298_v23  ;;  %v969_v23 = vld [vmem:[#allocation8 + $0x190] sm:$0xff] }
  0xca   :  { %1439 = vmatpush2.msra.mxu1 %v1297_v44  ;;  %v963_v44 = vld [vmem:[#allocation8 + $0x160] sm:$0xff] }
  0xcb   :  { %1440 = vmatprep.subr.mxu1 %v1292_v48  ;;  %v957_v48 = vld [vmem:[#allocation8 + $0x130] sm:$0xff] }
  0xcc   :  { %1441 = vmatpush2.msra.mxu1 %v1291_v53  ;;  %v952_v53 = vld [vmem:[#allocation8 + $0x108] sm:$0xff] }
  0xcd   :  { %1442 = vmatprep.subr.mxu1 %v1286_v57  ;;  %v951_v57 = vld [vmem:[#allocation8 + $0x100] sm:$0xff] }
  0xce   :  { %1443 = vmatpush2.msra.mxu1 %v1285_v0  ;;  %v946_v0 = vld [vmem:[#allocation8 + $0xd8] sm:$0xff] }
  0xcf   :  { %1444 = vmatprep.subr.mxu1 %v1280_v62  ;;  %v945_v62 = vld [vmem:[#allocation8 + $0xd0] sm:$0xff] }
  0xd0   :  { %1445 = vmatpush2.msra.mxu1 %v1279_v24  ;;  %v939_v24 = vld [vmem:[#allocation8 + $0xa0] sm:$0xff] }
  0xd1   :  { %1446 = vmatprep.subr.mxu1 %v1274_v54 }
  0xd2   :  { %1447 = vmatpush2.msra.mxu1 %v1273_v47  ;;  %v928_v47 = vld [vmem:[#allocation8 + $0x48] sm:$0xff] }
  0xd3   :  { %1448 = vmatprep.subr.mxu1 %v1268_v9 }
  0xd4   :  { %1449 = vmatpush2.msra.mxu1 %v1267_v33 }
  0xd5   :  { %1450 = vmatprep.subr.mxu1 %v1262_v21  ;;  %v927_v21 = vld [vmem:[#allocation8 + $0x40] sm:$0xff] }
  0xd6   :  { %1451 = vmatpush2.msra.mxu1 %v1261_v60 }
  0xd7   :  { %1452 = vmatprep.subr.mxu1 %v1256_v35  ;;  %v922_v35 = vld [vmem:[#allocation8 + $0x18] sm:$0xff] }
  0xd8   :  { %1453 = vmatpush2.msra.mxu1 %v1255_v37 }
  0xd9   :  { %1454 = vmatprep.subr.mxu1 %v1250_v32  ;;  %v921_v32 = vld [vmem:[#allocation8 + $0x10] sm:$0xff] }
  0xda   :  { %1455 = vmatpush2.msra.mxu1 %v1249_v56 }
  0xdb   :  { %1456 = vmatprep.subr.mxu1 %v1244_v49  ;;  %v1108_v49 = vld [vmem:[#allocation8 + $0x5e8] sm:$0xff] }
  0xdc   :  { %1457 = vmatpush2.msra.mxu1 %v1243_v63 }
  0xdd   :  { %1458 = vmatprep.subr.mxu1 %v1238_v13  ;;  %v1203_v13 = vld [vmem:[#allocation8 + $0x8e0] sm:$0xff] }
  0xde   :  { %1459 = vmatpush2.msra.mxu1 %v1237_v26  ;;  %v1198_v26 = vld [vmem:[#allocation8 + $0x8b8] sm:$0xff] }
  0xdf   :  { %1460 = vmatprep.subr.mxu1 %v1232_v18  ;;  %v1107_v18 = vld [vmem:[#allocation8 + $0x5e0] sm:$0xff] }
  0xe0   :  { %1461 = vmatpush2.msra.mxu1 %v1231_v11  ;;  %v1102_v11 = vld [vmem:[#allocation8 + $0x5b8] sm:$0xff] }
  0xe1   :  { %1462 = vmatprep.subr.mxu1 %v1226_v1  ;;  %v1192_v1 = vld [vmem:[#allocation8 + $0x888] sm:$0xff] }
  0xe2   :  { %1463 = vmatpush2.msra.mxu1 %v1225_v28  ;;  %v1191_v28 = vld [vmem:[#allocation8 + $0x880] sm:$0xff] }
  0xe3   :  { %1464 = vmatprep.subr.mxu1 %v1220_v6  ;;  %v1096_v6 = vld [vmem:[#allocation8 + $0x588] sm:$0xff] }
  0xe4   :  { %1465 = vmatpush2.msra.mxu1 %v1219_v42  ;;  %v1186_v42 = vld [vmem:[#allocation8 + $0x858] sm:$0xff] }
  0xe5   :  { %1466 = vmatprep.subr.mxu1 %v1214_v3  ;;  %v1095_v3 = vld [vmem:[#allocation8 + $0x580] sm:$0xff] }
  0xe6   :  { %1467 = vmatpush2.msra.mxu1 %v1213_v10  ;;  %v1185_v10 = vld [vmem:[#allocation8 + $0x850] sm:$0xff] }
  0xe7   :  { %1468 = vmatprep.subr.mxu1 %v1208_v38  ;;  %v1090_v38 = vld [vmem:[#allocation8 + $0x558] sm:$0xff] }
  0xe8   :  { %1469 = vmatpush2.msra.mxu1 %v1207_v36  ;;  %v1180_v36 = vld [vmem:[#allocation8 + $0x828] sm:$0xff] }
  0xe9   :  { %1548 = vmatprep.subr.mxu1 %v1204_v40  ;;  %v1089_v40 = vld [vmem:[#allocation8 + $0x550] sm:$0xff] }
 0x140   :  { %v474_v4 = vpop.f32.mrf.mxu1 }
 0x141   :  { %v475_v17 = vadd.f32 %v3098_v8, %v474_v4  ;;  %v1179_v4 = vld [vmem:[#allocation8 + $0x820] sm:$0xff] }
 0x142   :  { %v2231_v61 = vpop.f32.mrf.mxu1 }
 0x143   :  { %v3104_v12 = vmax.f32 %v475_v17, 0.0  ;;  %v1084_v61 = vld [vmem:[#allocation8 + $0x528] sm:$0xff]  ;;  %v1083_v17 = vld [vmem:[#allocation8 + $0x520] sm:$0xff] }
 0x148   :  { %v571_v5 = vpop.f32.mrf.mxu1 }
 0x149   :  { %v572_v7 = vadd.f32 %v3098_v8, %v571_v5  ;;  %v1173_v5 = vld [vmem:[#allocation8 + $0x7f0] sm:$0xff] }
 0x14a   :  { %v2238_v27 = vpop.f32.mrf.mxu1 }
 0x14b   :  { %v3102_v46 = vmax.f32 %v572_v7, 0.0  ;;  %v1078_v7 = vld [vmem:[#allocation8 + $0x4f8] sm:$0xff]  ;;  %v1168_v27 = vld [vmem:[#allocation8 + $0x7c8] sm:$0xff] }
 0x14d   :  { %1399 = vmatprep.mubr.f32.mxu0 %v3102_v46 }
 0x14e   :  { %1400 = vmatmul.mubr.f32.vlgmr.msra.gmra.mxu0 %v3104_v12 }
 0x14f   :  { %1478 = vmatpush1.msra.mxu0 %v1011_v15  ;;  %1541 = vmatprep.mubr.f32.mxu0 %v3102_v46  ;;  %v1077_v15 = vld [vmem:[#allocation8 + $0x4f0] sm:$0xff] }
 0x150   :  { %1479 = vmatprep.subr.mxu0 %v1006_v50  ;;  %v1167_v50 = vld [vmem:[#allocation8 + $0x7c0] sm:$0xff] }
 0x151   :  { %1480 = vmatpush1.msra.mxu0 %v1005_v45  ;;  %v1072_v45 = vld [vmem:[#allocation8 + $0x4c8] sm:$0xff] }
 0x152   :  { %1481 = vmatprep.subr.mxu0 %v1000_v16  ;;  %v1162_v16 = vld [vmem:[#allocation8 + $0x798] sm:$0xff] }
 0x153   :  { %1482 = vmatpush1.msra.mxu0 %v999_v52  ;;  %v1071_v52 = vld [vmem:[#allocation8 + $0x4c0] sm:$0xff] }
 0x154   :  { %1483 = vmatprep.subr.mxu0 %v994_v19  ;;  %v1161_v19 = vld [vmem:[#allocation8 + $0x790] sm:$0xff] }
 0x155   :  { %1484 = vmatpush1.msra.mxu0 %v993_v20  ;;  %v1066_v20 = vld [vmem:[#allocation8 + $0x498] sm:$0xff] }
 0x156   :  { %1485 = vmatprep.subr.mxu0 %v988_v59  ;;  %v1156_v59 = vld [vmem:[#allocation8 + $0x768] sm:$0xff] }
 0x157   :  { %1486 = vmatpush1.msra.mxu0 %v987_v2  ;;  %v1065_v2 = vld [vmem:[#allocation8 + $0x490] sm:$0xff] }
 0x158   :  { %1487 = vmatprep.subr.mxu0 %v982_v31  ;;  %v1155_v31 = vld [vmem:[#allocation8 + $0x760] sm:$0xff] }
 0x159   :  { %1488 = vmatpush1.msra.mxu0 %v981_v39  ;;  %v1060_v39 = vld [vmem:[#allocation8 + $0x468] sm:$0xff] }
 0x15a   :  { %1489 = vmatprep.subr.mxu0 %v976_v58  ;;  %v1150_v58 = vld [vmem:[#allocation8 + $0x738] sm:$0xff] }
 0x15b   :  { %1490 = vmatpush1.msra.mxu0 %v975_v51  ;;  %v1059_v51 = vld [vmem:[#allocation8 + $0x460] sm:$0xff] }
 0x15c   :  { %1491 = vmatprep.subr.mxu0 %v970_v29  ;;  %v1149_v29 = vld [vmem:[#allocation8 + $0x730] sm:$0xff] }
 0x15d   :  { %1492 = vmatpush1.msra.mxu0 %v969_v23  ;;  %v1054_v23 = vld [vmem:[#allocation8 + $0x438] sm:$0xff] }
 0x15e   :  { %1493 = vmatprep.subr.mxu0 %v964_v34  ;;  %v1144_v34 = vld [vmem:[#allocation8 + $0x708] sm:$0xff] }
 0x15f   :  { %1494 = vmatpush1.msra.mxu0 %v963_v44  ;;  %v1053_v44 = vld [vmem:[#allocation8 + $0x430] sm:$0xff] }
 0x160   :  { %1495 = vmatprep.subr.mxu0 %v958_v43  ;;  %v1143_v43 = vld [vmem:[#allocation8 + $0x700] sm:$0xff] }
 0x161   :  { %1496 = vmatpush1.msra.mxu0 %v957_v48  ;;  %v1048_v48 = vld [vmem:[#allocation8 + $0x408] sm:$0xff] }
 0x162   :  { %1497 = vmatprep.subr.mxu0 %v952_v53  ;;  %v1138_v53 = vld [vmem:[#allocation8 + $0x6d8] sm:$0xff] }
 0x163   :  { %1498 = vmatpush1.msra.mxu0 %v951_v57  ;;  %v1047_v57 = vld [vmem:[#allocation8 + $0x400] sm:$0xff] }
 0x164   :  { %1499 = vmatprep.subr.mxu0 %v946_v0  ;;  %v1137_v0 = vld [vmem:[#allocation8 + $0x6d0] sm:$0xff] }
 0x165   :  { %v812_v14 = vpop.f32.mrf.mxu1  ;;  %1500 = vmatpush1.msra.mxu0 %v945_v62  ;;  %v1042_v62 = vld [vmem:[#allocation8 + $0x3d8] sm:$0xff] }
 0x166   :  { %1501 = vmatprep.subr.mxu0 %v940_v25  ;;  %v813_v9 = vadd.f32 %v3098_v8, %v812_v14  ;;  %v1132_v25 = vld [vmem:[#allocation8 + $0x6a8] sm:$0xff]  ;;  %v1041_v14 = vld [vmem:[#allocation8 + $0x3d0] sm:$0xff] }
 0x167   :  { %v2245_v54 = vpop.f32.mrf.mxu1  ;;  %1502 = vmatpush1.msra.mxu0 %v939_v24  ;;  %v1131_v24 = vld [vmem:[#allocation8 + $0x6a0] sm:$0xff] }
 0x168   :  { %1503 = vmatprep.subr.mxu0 %v934_v30  ;;  %v3113_v63 = vmax.f32 %v813_v9, 0.0  ;;  %v1036_v30 = vld [vmem:[#allocation8 + $0x3a8] sm:$0xff]  ;;  %v1126_v54 = vld [vmem:[#allocation8 + $0x678] sm:$0xff] }
 0x169   :  { %v909_v33 = vpop.f32.mrf.mxu1  ;;  %1504 = vmatpush1.msra.mxu0 %v933_v22  ;;  %v1035_v22 = vld [vmem:[#allocation8 + $0x3a0] sm:$0xff]  ;;  %v1030_v9 = vld [vmem:[#allocation8 + $0x378] sm:$0xff] }
 0x16a   :  { %v910_v60 = vadd.f32 %v3098_v8, %v909_v33  ;;  %1505 = vmatprep.subr.mxu0 %v928_v47  ;;  %v1174_v8 = vld [vmem:[#allocation8 + $0x7f8] sm:$0xff]  ;;  %v1125_v47 = vld [vmem:[#allocation8 + $0x670] sm:$0xff]  ;;  %v1120_v33 = vld [vmem:[#allocation8 + $0x648] sm:$0xff] }
 0x16b   :  { %v2252_v37 = vpop.f32.mrf.mxu1  ;;  %1506 = vmatpush1.msra.mxu0 %v927_v21  ;;  %v1029_v21 = vld [vmem:[#allocation8 + $0x370] sm:$0xff] }
 0x16c   :  { %v3111_v56 = vmax.f32 %v910_v60, 0.0  ;;  %1507 = vmatprep.subr.mxu0 %v922_v35  ;;  %v1119_v60 = vld [vmem:[#allocation8 + $0x640] sm:$0xff]  ;;  %v1024_v35 = vld [vmem:[#allocation8 + $0x348] sm:$0xff]  ;;  %v1114_v37 = vld [vmem:[#allocation8 + $0x618] sm:$0xff] }
 0x16d   :  { %1508 = vmatpush1.msra.mxu0 %v921_v32  ;;  %v1023_v32 = vld [vmem:[#allocation8 + $0x340] sm:$0xff] }
 0x16e   :  { %1470 = vmatprep.mubr.f32.mxu1 %v3111_v56  ;;  %1509 = vmatprep.subr.mxu0 %v1108_v49  ;;  %v1113_v49 = vld [vmem:[#allocation8 + $0x610] sm:$0xff] }
 0x16f   :  { %1471 = vmatmul.mubr.f32.vlgmr.msra.gmra.mxu1 %v3113_v63  ;;  %1510 = vmatpush2.msra.mxu0 %v1107_v18  ;;  %v1017_v18 = vld [vmem:[#allocation8 + $0x310] sm:$0xff] }
 0x170   :  { %1549 = vmatpush1.msra.mxu1 %v1203_v13  ;;  %1612 = vmatprep.mubr.f32.mxu1 %v3111_v56  ;;  %v1018_v13 = vld [vmem:[#allocation8 + $0x318] sm:$0xff] }
 0x171   :  { %1550 = vmatprep.subr.mxu1 %v1198_v26  ;;  %1511 = vmatprep.subr.mxu0 %v1102_v11  ;;  %v1300_v26 = vld [vmem:[#allocation8 + $0xbe8] sm:$0xff]  ;;  %v1294_v11 = vld [vmem:[#allocation8 + $0xbb8] sm:$0xff] }
 0x172   :  { %1551 = vmatpush1.msra.mxu1 %v1197_v41  ;;  %1512 = vmatpush2.msra.mxu0 %v1101_v55  ;;  %v1299_v41 = vld [vmem:[#allocation8 + $0xbe0] sm:$0xff]  ;;  %v1293_v55 = vld [vmem:[#allocation8 + $0xbb0] sm:$0xff] }
 0x173   :  { %1552 = vmatprep.subr.mxu1 %v1192_v1  ;;  %1513 = vmatprep.subr.mxu0 %v1096_v6  ;;  %v1014_v1 = vld [vmem:[#allocation8 + $0x2f8] sm:$0xff]  ;;  %v1288_v6 = vld [vmem:[#allocation8 + $0xb88] sm:$0xff] }
 0x174   :  { %1553 = vmatpush1.msra.mxu1 %v1191_v28  ;;  %1514 = vmatpush2.msra.mxu0 %v1095_v3  ;;  %v1013_v28 = vld [vmem:[#allocation8 + $0x2f0] sm:$0xff]  ;;  %v1008_v3 = vld [vmem:[#allocation8 + $0x2c8] sm:$0xff] }
 0x175   :  { %1554 = vmatprep.subr.mxu1 %v1186_v42  ;;  %1515 = vmatprep.subr.mxu0 %v1090_v38  ;;  %v1287_v42 = vld [vmem:[#allocation8 + $0xb80] sm:$0xff] }
 0x176   :  { %1555 = vmatpush1.msra.mxu1 %v1185_v10  ;;  %1516 = vmatpush2.msra.mxu0 %v1089_v40  ;;  %v1282_v10 = vld [vmem:[#allocation8 + $0xb58] sm:$0xff]  ;;  %v1007_v38 = vld [vmem:[#allocation8 + $0x2c0] sm:$0xff] }
 0x177   :  { %1556 = vmatprep.subr.mxu1 %v1180_v36  ;;  %1517 = vmatprep.subr.mxu0 %v1084_v61  ;;  %v1281_v36 = vld [vmem:[#allocation8 + $0xb50] sm:$0xff]  ;;  %v1002_v40 = vld [vmem:[#allocation8 + $0x298] sm:$0xff] }
 0x178   :  { %1557 = vmatpush1.msra.mxu1 %v1179_v4  ;;  %1518 = vmatpush2.msra.mxu0 %v1083_v17  ;;  %v1276_v4 = vld [vmem:[#allocation8 + $0xb28] sm:$0xff]  ;;  %v1001_v61 = vld [vmem:[#allocation8 + $0x290] sm:$0xff] }
 0x179   :  { %1558 = vmatprep.subr.mxu1 %v1174_v8  ;;  %1519 = vmatprep.subr.mxu0 %v1078_v7  ;;  %v1275_v8 = vld [vmem:[#allocation8 + $0xb20] sm:$0xff]  ;;  %v996_v17 = vld [vmem:[#allocation8 + $0x268] sm:$0xff] }
 0x17a   :  { %1559 = vmatpush1.msra.mxu1 %v1173_v5  ;;  %1520 = vmatpush2.msra.mxu0 %v1077_v15  ;;  %v1270_v5 = vld [vmem:[#allocation8 + $0xaf8] sm:$0xff]  ;;  %v995_v7 = vld [vmem:[#allocation8 + $0x260] sm:$0xff] }
 0x17b   :  { %1560 = vmatprep.subr.mxu1 %v1168_v27  ;;  %1521 = vmatprep.subr.mxu0 %v1072_v45  ;;  %v1269_v27 = vld [vmem:[#allocation8 + $0xaf0] sm:$0xff]  ;;  %v990_v15 = vld [vmem:[#allocation8 + $0x238] sm:$0xff]  ;;  %v1263_v45 = vld [vmem:[#allocation8 + $0xac0] sm:$0xff] }
 0x17c   :  { %1561 = vmatpush1.msra.mxu1 %v1167_v50  ;;  %1522 = vmatpush2.msra.mxu0 %v1071_v52  ;;  %v1264_v50 = vld [vmem:[#allocation8 + $0xac8] sm:$0xff]  ;;  %v1258_v52 = vld [vmem:[#allocation8 + $0xa98] sm:$0xff] }
 0x17d   :  { %1562 = vmatprep.subr.mxu1 %v1162_v16  ;;  %1523 = vmatprep.subr.mxu0 %v1066_v20  ;;  %v984_v16 = vld [vmem:[#allocation8 + $0x208] sm:$0xff]  ;;  %v1257_v20 = vld [vmem:[#allocation8 + $0xa90] sm:$0xff] }
 0x17e   :  { %1563 = vmatpush1.msra.mxu1 %v1161_v19  ;;  %1524 = vmatpush2.msra.mxu0 %v1065_v2  ;;  %v983_v19 = vld [vmem:[#allocation8 + $0x200] sm:$0xff]  ;;  %v1252_v2 = vld [vmem:[#allocation8 + $0xa68] sm:$0xff] }
 0x17f   :  { %1564 = vmatprep.subr.mxu1 %v1156_v59  ;;  %1525 = vmatprep.subr.mxu0 %v1060_v39  ;;  %v978_v59 = vld [vmem:[#allocation8 + $0x1d8] sm:$0xff]  ;;  %v1251_v39 = vld [vmem:[#allocation8 + $0xa60] sm:$0xff] }
 0x180   :  { %1565 = vmatpush1.msra.mxu1 %v1155_v31  ;;  %1526 = vmatpush2.msra.mxu0 %v1059_v51  ;;  %v977_v31 = vld [vmem:[#allocation8 + $0x1d0] sm:$0xff]  ;;  %v1246_v51 = vld [vmem:[#allocation8 + $0xa38] sm:$0xff] }
 0x181   :  { %1566 = vmatprep.subr.mxu1 %v1150_v58  ;;  %1527 = vmatprep.subr.mxu0 %v1054_v23  ;;  %v972_v58 = vld [vmem:[#allocation8 + $0x1a8] sm:$0xff]  ;;  %v1245_v23 = vld [vmem:[#allocation8 + $0xa30] sm:$0xff] }
 0x182   :  { %1567 = vmatpush1.msra.mxu1 %v1149_v29  ;;  %1528 = vmatpush2.msra.mxu0 %v1053_v44  ;;  %v971_v29 = vld [vmem:[#allocation8 + $0x1a0] sm:$0xff]  ;;  %v1240_v44 = vld [vmem:[#allocation8 + $0xa08] sm:$0xff] }
 0x183   :  { %1568 = vmatprep.subr.mxu1 %v1144_v34  ;;  %1529 = vmatprep.subr.mxu0 %v1048_v48  ;;  %v966_v34 = vld [vmem:[#allocation8 + $0x178] sm:$0xff]  ;;  %v1239_v48 = vld [vmem:[#allocation8 + $0xa00] sm:$0xff] }
 0x184   :  { %1569 = vmatpush1.msra.mxu1 %v1143_v43  ;;  %1530 = vmatpush2.msra.mxu0 %v1047_v57  ;;  %v965_v43 = vld [vmem:[#allocation8 + $0x170] sm:$0xff]  ;;  %v1234_v57 = vld [vmem:[#allocation8 + $0x9d8] sm:$0xff] }
 0x185   :  { %1570 = vmatprep.subr.mxu1 %v1138_v53  ;;  %1531 = vmatprep.subr.mxu0 %v1042_v62  ;;  %v960_v53 = vld [vmem:[#allocation8 + $0x148] sm:$0xff]  ;;  %v1233_v62 = vld [vmem:[#allocation8 + $0x9d0] sm:$0xff] }
 0x186   :  { %1571 = vmatpush1.msra.mxu1 %v1137_v0  ;;  %1532 = vmatpush2.msra.mxu0 %v1041_v14  ;;  %v959_v0 = vld [vmem:[#allocation8 + $0x140] sm:$0xff]  ;;  %v1228_v14 = vld [vmem:[#allocation8 + $0x9a8] sm:$0xff] }
 0x187   :  { %1572 = vmatprep.subr.mxu1 %v1132_v25  ;;  %1533 = vmatprep.subr.mxu0 %v1036_v30  ;;  %v954_v25 = vld [vmem:[#allocation8 + $0x118] sm:$0xff]  ;;  %v1227_v30 = vld [vmem:[#allocation8 + $0x9a0] sm:$0xff] }
 0x188   :  { %1573 = vmatpush1.msra.mxu1 %v1131_v24  ;;  %1534 = vmatpush2.msra.mxu0 %v1035_v22  ;;  %v953_v24 = vld [vmem:[#allocation8 + $0x110] sm:$0xff]  ;;  %v1222_v22 = vld [vmem:[#allocation8 + $0x978] sm:$0xff] }
 0x189   :  { %1574 = vmatprep.subr.mxu1 %v1126_v54  ;;  %1535 = vmatprep.subr.mxu0 %v1030_v9  ;;  %v948_v54 = vld [vmem:[#allocation8 + $0xe8] sm:$0xff]  ;;  %v1221_v9 = vld [vmem:[#allocation8 + $0x970] sm:$0xff] }
 0x18a   :  { %1575 = vmatpush1.msra.mxu1 %v1125_v47  ;;  %1536 = vmatpush2.msra.mxu0 %v1029_v21  ;;  %v947_v47 = vld [vmem:[#allocation8 + $0xe0] sm:$0xff]  ;;  %v1216_v21 = vld [vmem:[#allocation8 + $0x948] sm:$0xff] }
 0x18b   :  { %1576 = vmatprep.subr.mxu1 %v1120_v33  ;;  %1537 = vmatprep.subr.mxu0 %v1024_v35  ;;  %v942_v33 = vld [vmem:[#allocation8 + $0xb8] sm:$0xff]  ;;  %v1215_v35 = vld [vmem:[#allocation8 + $0x940] sm:$0xff] }
 0x18c   :  { %1577 = vmatpush1.msra.mxu1 %v1119_v60  ;;  %1538 = vmatpush2.msra.mxu0 %v1023_v32  ;;  %v941_v60 = vld [vmem:[#allocation8 + $0xb0] sm:$0xff]  ;;  %v1210_v32 = vld [vmem:[#allocation8 + $0x918] sm:$0xff] }
 0x18d   :  { %1578 = vmatprep.subr.mxu1 %v1114_v37  ;;  %1539 = vmatprep.subr.mxu0 %v1018_v13  ;;  %v936_v37 = vld [vmem:[#allocation8 + $0x88] sm:$0xff]  ;;  %v1209_v13 = vld [vmem:[#allocation8 + $0x910] sm:$0xff] }
 0x18e   :  { %1579 = vmatpush1.msra.mxu1 %v1113_v49  ;;  %1540 = vmatpush2.msra.mxu0 %v1017_v18  ;;  %v935_v49 = vld [vmem:[#allocation8 + $0x80] sm:$0xff]  ;;  %v1206_v18 = vld [vmem:[#allocation8 + $0x8f8] sm:$0xff] }
 0x18f   :  { %1580 = vmatprep.subr.mxu1 %v1300_v26  ;;  %1542 = vmatmul.mubr.f32.vlgmr.msra.gmra.mxu0 %v3104_v12  ;;  %v930_v26 = vld [vmem:[#allocation8 + $0x58] sm:$0xff] }
 0x190   :  { %1581 = vmatpush2.msra.mxu1 %v1299_v41  ;;  %1619 = vmatprep.subr.mxu0 %v1014_v1  ;;  %v1205_v41 = vld [vmem:[#allocation8 + $0x8f0] sm:$0xff] }
 0x191   :  { %1582 = vmatprep.subr.mxu1 %v1294_v11  ;;  %1620 = vmatpush1.msra.mxu0 %v1013_v28  ;;  %v1200_v11 = vld [vmem:[#allocation8 + $0x8c8] sm:$0xff]  ;;  %v929_v1 = vld [vmem:[#allocation8 + $0x50] sm:$0xff] }
 0x192   :  { %1583 = vmatpush2.msra.mxu1 %v1293_v55  ;;  %1683 = vmatprep.mubr.f32.mxu0 %v3102_v46  ;;  %v989_v46 = vld [vmem:[#allocation8 + $0x230] sm:$0xff]  ;;  %v1199_v55 = vld [vmem:[#allocation8 + $0x8c0] sm:$0xff]  ;;  %v924_v28 = vld [vmem:[#allocation8 + $0x28] sm:$0xff] }
 0x193   :  { %1584 = vmatprep.subr.mxu1 %v1288_v6  ;;  %1621 = vmatprep.subr.mxu0 %v1008_v3  ;;  %v1194_v6 = vld [vmem:[#allocation8 + $0x898] sm:$0xff]  ;;  %v1193_v3 = vld [vmem:[#allocation8 + $0x890] sm:$0xff] }
 0x194   :  { %1585 = vmatpush2.msra.mxu1 %v1287_v42  ;;  %1622 = vmatpush1.msra.mxu0 %v1007_v38  ;;  %v923_v42 = vld [vmem:[#allocation8 + $0x20] sm:$0xff]  ;;  %v1188_v38 = vld [vmem:[#allocation8 + $0x868] sm:$0xff] }
 0x195   :  { %1586 = vmatprep.subr.mxu1 %v1282_v10  ;;  %1623 = vmatprep.subr.mxu0 %v1002_v40  ;;  %v1110_v10 = vld [vmem:[#allocation8 + $0x5f8] sm:$0xff]  ;;  %v1187_v40 = vld [vmem:[#allocation8 + $0x860] sm:$0xff] }
 0x196   :  { %1587 = vmatpush2.msra.mxu1 %v1281_v36  ;;  %1624 = vmatpush1.msra.mxu0 %v1001_v61  ;;  %v1109_v36 = vld [vmem:[#allocation8 + $0x5f0] sm:$0xff]  ;;  %v1182_v61 = vld [vmem:[#allocation8 + $0x838] sm:$0xff] }
 0x197   :  { %1588 = vmatprep.subr.mxu1 %v1276_v4  ;;  %1625 = vmatprep.subr.mxu0 %v996_v17  ;;  %v1104_v4 = vld [vmem:[#allocation8 + $0x5c8] sm:$0xff]  ;;  %v1098_v17 = vld [vmem:[#allocation8 + $0x598] sm:$0xff] }
 0x198   :  { %1589 = vmatpush2.msra.mxu1 %v1275_v8  ;;  %1626 = vmatpush1.msra.mxu0 %v995_v7  ;;  %v1103_v8 = vld [vmem:[#allocation8 + $0x5c0] sm:$0xff]  ;;  %v1097_v7 = vld [vmem:[#allocation8 + $0x590] sm:$0xff] }
 0x199   :  { %1590 = vmatprep.subr.mxu1 %v1270_v5  ;;  %1627 = vmatprep.subr.mxu0 %v990_v15  ;;  %v1176_v5 = vld [vmem:[#allocation8 + $0x808] sm:$0xff] }
 0x19a   :  { %1591 = vmatpush2.msra.mxu1 %v1269_v27  ;;  %1628 = vmatpush1.msra.mxu0 %v989_v46  ;;  %v1175_v27 = vld [vmem:[#allocation8 + $0x800] sm:$0xff]  ;;  %v1092_v15 = vld [vmem:[#allocation8 + $0x568] sm:$0xff] }
 0x19b   :  { %1592 = vmatprep.subr.mxu1 %v1264_v50  ;;  %1629 = vmatprep.subr.mxu0 %v984_v16  ;;  %v1170_v50 = vld [vmem:[#allocation8 + $0x7d8] sm:$0xff]  ;;  %v1091_v46 = vld [vmem:[#allocation8 + $0x560] sm:$0xff] }
 0x19c   :  { %1593 = vmatpush2.msra.mxu1 %v1263_v45  ;;  %1630 = vmatpush1.msra.mxu0 %v983_v19  ;;  %v1169_v45 = vld [vmem:[#allocation8 + $0x7d0] sm:$0xff]  ;;  %v1086_v16 = vld [vmem:[#allocation8 + $0x538] sm:$0xff] }
 0x19d   :  { %1594 = vmatprep.subr.mxu1 %v1258_v52  ;;  %1631 = vmatprep.subr.mxu0 %v978_v59  ;;  %v1164_v52 = vld [vmem:[#allocation8 + $0x7a8] sm:$0xff]  ;;  %v1085_v19 = vld [vmem:[#allocation8 + $0x530] sm:$0xff] }
 0x19e   :  { %1595 = vmatpush2.msra.mxu1 %v1257_v20  ;;  %1632 = vmatpush1.msra.mxu0 %v977_v31  ;;  %v1163_v20 = vld [vmem:[#allocation8 + $0x7a0] sm:$0xff]  ;;  %v1080_v59 = vld [vmem:[#allocation8 + $0x508] sm:$0xff] }
 0x19f   :  { %1596 = vmatprep.subr.mxu1 %v1252_v2  ;;  %1633 = vmatprep.subr.mxu0 %v972_v58  ;;  %v1158_v2 = vld [vmem:[#allocation8 + $0x778] sm:$0xff]  ;;  %v1079_v31 = vld [vmem:[#allocation8 + $0x500] sm:$0xff] }
 0x1a0   :  { %1597 = vmatpush2.msra.mxu1 %v1251_v39  ;;  %1634 = vmatpush1.msra.mxu0 %v971_v29  ;;  %v1157_v39 = vld [vmem:[#allocation8 + $0x770] sm:$0xff]  ;;  %v1074_v58 = vld [vmem:[#allocation8 + $0x4d8] sm:$0xff] }
 0x1a1   :  { %1598 = vmatprep.subr.mxu1 %v1246_v51  ;;  %1635 = vmatprep.subr.mxu0 %v966_v34  ;;  %v1152_v51 = vld [vmem:[#allocation8 + $0x748] sm:$0xff]  ;;  %v1073_v29 = vld [vmem:[#allocation8 + $0x4d0] sm:$0xff] }
 0x1a2   :  { %1599 = vmatpush2.msra.mxu1 %v1245_v23  ;;  %1636 = vmatpush1.msra.mxu0 %v965_v43  ;;  %v1151_v23 = vld [vmem:[#allocation8 + $0x740] sm:$0xff]  ;;  %v1068_v34 = vld [vmem:[#allocation8 + $0x4a8] sm:$0xff] }
 0x1a3   :  { %1600 = vmatprep.subr.mxu1 %v1240_v44  ;;  %1637 = vmatprep.subr.mxu0 %v960_v53  ;;  %v1146_v44 = vld [vmem:[#allocation8 + $0x718] sm:$0xff]  ;;  %v1067_v43 = vld [vmem:[#allocation8 + $0x4a0] sm:$0xff] }
 0x1a4   :  { %1601 = vmatpush2.msra.mxu1 %v1239_v48  ;;  %1638 = vmatpush1.msra.mxu0 %v959_v0  ;;  %v1145_v48 = vld [vmem:[#allocation8 + $0x710] sm:$0xff]  ;;  %v1062_v53 = vld [vmem:[#allocation8 + $0x478] sm:$0xff] }
 0x1a5   :  { %1602 = vmatprep.subr.mxu1 %v1234_v57  ;;  %1639 = vmatprep.subr.mxu0 %v954_v25  ;;  %v1140_v57 = vld [vmem:[#allocation8 + $0x6e8] sm:$0xff]  ;;  %v1061_v0 = vld [vmem:[#allocation8 + $0x470] sm:$0xff] }
 0x1a6   :  { %1603 = vmatpush2.msra.mxu1 %v1233_v62  ;;  %1640 = vmatpush1.msra.mxu0 %v953_v24  ;;  %v1139_v62 = vld [vmem:[#allocation8 + $0x6e0] sm:$0xff]  ;;  %v1056_v25 = vld [vmem:[#allocation8 + $0x448] sm:$0xff] }
 0x1a7   :  { %1604 = vmatprep.subr.mxu1 %v1228_v14  ;;  %1641 = vmatprep.subr.mxu0 %v948_v54  ;;  %v1134_v14 = vld [vmem:[#allocation8 + $0x6b8] sm:$0xff]  ;;  %v1055_v24 = vld [vmem:[#allocation8 + $0x440] sm:$0xff] }
 0x1a8   :  { %1605 = vmatpush2.msra.mxu1 %v1227_v30  ;;  %1642 = vmatpush1.msra.mxu0 %v947_v47  ;;  %v1133_v30 = vld [vmem:[#allocation8 + $0x6b0] sm:$0xff]  ;;  %v1050_v54 = vld [vmem:[#allocation8 + $0x418] sm:$0xff] }
 0x1a9   :  { %1606 = vmatprep.subr.mxu1 %v1222_v22  ;;  %1643 = vmatprep.subr.mxu0 %v942_v33  ;;  %v1128_v22 = vld [vmem:[#allocation8 + $0x688] sm:$0xff]  ;;  %v1049_v47 = vld [vmem:[#allocation8 + $0x410] sm:$0xff] }
 0x1aa   :  { %1607 = vmatpush2.msra.mxu1 %v1221_v9  ;;  %1644 = vmatpush1.msra.mxu0 %v941_v60  ;;  %v1127_v9 = vld [vmem:[#allocation8 + $0x680] sm:$0xff]  ;;  %v1044_v33 = vld [vmem:[#allocation8 + $0x3e8] sm:$0xff] }
 0x1ab   :  { %1608 = vmatprep.subr.mxu1 %v1216_v21  ;;  %1645 = vmatprep.subr.mxu0 %v936_v37  ;;  %v1122_v21 = vld [vmem:[#allocation8 + $0x658] sm:$0xff]  ;;  %v1043_v60 = vld [vmem:[#allocation8 + $0x3e0] sm:$0xff] }
 0x1ac   :  { %1609 = vmatpush2.msra.mxu1 %v1215_v35  ;;  %1646 = vmatpush1.msra.mxu0 %v935_v49  ;;  %v1121_v35 = vld [vmem:[#allocation8 + $0x650] sm:$0xff]  ;;  %v1038_v37 = vld [vmem:[#allocation8 + $0x3b8] sm:$0xff] }
 0x1ad   :  { %1610 = vmatprep.subr.mxu1 %v1210_v32  ;;  %1647 = vmatprep.subr.mxu0 %v930_v26  ;;  %v1116_v32 = vld [vmem:[#allocation8 + $0x628] sm:$0xff]  ;;  %v1037_v49 = vld [vmem:[#allocation8 + $0x3b0] sm:$0xff] }
 0x1ae   :  { %1611 = vmatpush2.msra.mxu1 %v1209_v13  ;;  %1648 = vmatpush1.msra.mxu0 %v929_v1  ;;  %v1115_v13 = vld [vmem:[#allocation8 + $0x620] sm:$0xff]  ;;  %v1032_v26 = vld [vmem:[#allocation8 + $0x388] sm:$0xff]  ;;  %v1026_v1 = vld [vmem:[#allocation8 + $0x358] sm:$0xff] }
 0x1af   :  { %1613 = vmatmul.mubr.f32.vlgmr.msra.gmra.mxu1 %v3113_v63  ;;  %1690 = vmatprep.subr.mxu1 %v1206_v18  ;;  %v1302_v18 = vld [vmem:[#allocation8 + $0xbf8] sm:$0xff] }
 0x1b0   :  { %1691 = vmatpush1.msra.mxu1 %v1205_v41  ;;  %1754 = vmatprep.mubr.f32.mxu1 %v3111_v56  ;;  %v1181_v56 = vld [vmem:[#allocation8 + $0x830] sm:$0xff]  ;;  %v1031_v41 = vld [vmem:[#allocation8 + $0x380] sm:$0xff] }
 0x1b1   :  { %1692 = vmatprep.subr.mxu1 %v1200_v11  ;;  %1649 = vmatprep.subr.mxu0 %v924_v28  ;;  %v1301_v11 = vld [vmem:[#allocation8 + $0xbf0] sm:$0xff] }
 0x1b2   :  { %1693 = vmatpush1.msra.mxu1 %v1199_v55  ;;  %1650 = vmatpush1.msra.mxu0 %v923_v42  ;;  %v1296_v55 = vld [vmem:[#allocation8 + $0xbc8] sm:$0xff]  ;;  %v1025_v28 = vld [vmem:[#allocation8 + $0x350] sm:$0xff] }
 0x1b3   :  { %1694 = vmatprep.subr.mxu1 %v1194_v6  ;;  %1651 = vmatprep.subr.mxu0 %v1110_v10  ;;  %v1295_v6 = vld [vmem:[#allocation8 + $0xbc0] sm:$0xff]  ;;  %v1020_v42 = vld [vmem:[#allocation8 + $0x328] sm:$0xff] }
 0x1b4   :  { %1695 = vmatpush1.msra.mxu1 %v1193_v3  ;;  %1652 = vmatpush2.msra.mxu0 %v1109_v36  ;;  %v1290_v3 = vld [vmem:[#allocation8 + $0xb98] sm:$0xff]  ;;  %v1019_v10 = vld [vmem:[#allocation8 + $0x320] sm:$0xff]  ;;  %v1284_v36 = vld [vmem:[#allocation8 + $0xb68] sm:$0xff] }
 0x1b5   :  { %1696 = vmatprep.subr.mxu1 %v1188_v38  ;;  %1653 = vmatprep.subr.mxu0 %v1104_v4  ;;  %v1289_v38 = vld [vmem:[#allocation8 + $0xb90] sm:$0xff]  ;;  %v1283_v4 = vld [vmem:[#allocation8 + $0xb60] sm:$0xff] }
 0x1b6   :  { %1697 = vmatpush1.msra.mxu1 %v1187_v40  ;;  %1654 = vmatpush2.msra.mxu0 %v1103_v8  ;;  %v1798_v40 = vld [vmem:[#allocation11 + $0xf8] sm:$0xff] }
 0x1b7   :  { %1698 = vmatprep.subr.mxu1 %v1182_v61  ;;  %1655 = vmatprep.subr.mxu0 %v1098_v17  ;;  %v1782_v61 = vld [vmem:[#allocation11 + $0x78] sm:$0xff]  ;;  %v1277_v17 = vld [vmem:[#allocation8 + $0xb30] sm:$0xff] }
 0x1b8   :  { %1699 = vmatpush1.msra.mxu1 %v1181_v56  ;;  %1656 = vmatpush2.msra.mxu0 %v1097_v7  ;;  %v1278_v8 = vld [vmem:[#allocation8 + $0xb38] sm:$0xff]  ;;  %v1272_v7 = vld [vmem:[#allocation8 + $0xb08] sm:$0xff] }
 0x1b9   :  { %1700 = vmatprep.subr.mxu1 %v1176_v5  ;;  %1657 = vmatprep.subr.mxu0 %v1092_v15  ;;  %v1797_v56 = vld [vmem:[#allocation11 + $0xf0] sm:$0xff]  ;;  %v1271_v15 = vld [vmem:[#allocation8 + $0xb00] sm:$0xff] }
 0x1ba   :  { %1701 = vmatpush1.msra.mxu1 %v1175_v27  ;;  %1658 = vmatpush2.msra.mxu0 %v1091_v46  ;;  %v1781_v5 = vld [vmem:[#allocation11 + $0x70] sm:$0xff]  ;;  %v1796_v27 = vld [vmem:[#allocation11 + $0xe8] sm:$0xff] }
 0x1bb   :  { %1702 = vmatprep.subr.mxu1 %v1170_v50  ;;  %1659 = vmatprep.subr.mxu0 %v1086_v16  ;;  %v1780_v50 = vld [vmem:[#allocation11 + $0x68] sm:$0xff]  ;;  %v1266_v46 = vld [vmem:[#allocation8 + $0xad8] sm:$0xff] }
 0x1bc   :  { %1703 = vmatpush1.msra.mxu1 %v1169_v45  ;;  %1660 = vmatpush2.msra.mxu0 %v1085_v19  ;;  %v1795_v45 = vld [vmem:[#allocation11 + $0xe0] sm:$0xff]  ;;  %v1265_v16 = vld [vmem:[#allocation8 + $0xad0] sm:$0xff]  ;;  %v1794_v19 = vld [vmem:[#allocation11 + $0xd8] sm:$0xff] }
 0x1bd   :  { %1704 = vmatprep.subr.mxu1 %v1164_v52  ;;  %1661 = vmatprep.subr.mxu0 %v1080_v59  ;;  %v1260_v52 = vld [vmem:[#allocation8 + $0xaa8] sm:$0xff]  ;;  %v1778_v59 = vld [vmem:[#allocation11 + $0x58] sm:$0xff] }
 0x1be   :  { %1705 = vmatpush1.msra.mxu1 %v1163_v20  ;;  %1662 = vmatpush2.msra.mxu0 %v1079_v31  ;;  %v1259_v20 = vld [vmem:[#allocation8 + $0xaa0] sm:$0xff]  ;;  %v1793_v31 = vld [vmem:[#allocation11 + $0xd0] sm:$0xff] }
 0x1bf   :  { %1706 = vmatprep.subr.mxu1 %v1158_v2  ;;  %1663 = vmatprep.subr.mxu0 %v1074_v58  ;;  %v1254_v2 = vld [vmem:[#allocation8 + $0xa78] sm:$0xff] }
 0x1c0   :  { %1707 = vmatpush1.msra.mxu1 %v1157_v39  ;;  %1664 = vmatpush2.msra.mxu0 %v1073_v29  ;;  %v1253_v39 = vld [vmem:[#allocation8 + $0xa70] sm:$0xff] }
 0x1c1   :  { %1708 = vmatprep.subr.mxu1 %v1152_v51  ;;  %1665 = vmatprep.subr.mxu0 %v1068_v34  ;;  %v1777_v58 = vld [vmem:[#allocation11 + $0x50] sm:$0xff]  ;;  %v1248_v51 = vld [vmem:[#allocation8 + $0xa48] sm:$0xff] }
 0x1c2   :  { %1709 = vmatpush1.msra.mxu1 %v1151_v23  ;;  %1666 = vmatpush2.msra.mxu0 %v1067_v43  ;;  %v1792_v29 = vld [vmem:[#allocation11 + $0xc8] sm:$0xff]  ;;  %v1247_v23 = vld [vmem:[#allocation8 + $0xa40] sm:$0xff] }
 0x1c3   :  { %1710 = vmatprep.subr.mxu1 %v1146_v44  ;;  %1667 = vmatprep.subr.mxu0 %v1062_v53  ;;  %v1776_v34 = vld [vmem:[#allocation11 + $0x48] sm:$0xff]  ;;  %v1242_v44 = vld [vmem:[#allocation8 + $0xa18] sm:$0xff]  ;;  %v1791_v43 = vld [vmem:[#allocation11 + $0xc0] sm:$0xff] }
 0x1c4   :  { %1711 = vmatpush1.msra.mxu1 %v1145_v48  ;;  %1668 = vmatpush2.msra.mxu0 %v1061_v0  ;;  %v1241_v48 = vld [vmem:[#allocation8 + $0xa10] sm:$0xff]  ;;  %v1775_v53 = vld [vmem:[#allocation11 + $0x40] sm:$0xff]  ;;  %v1790_v0 = vld [vmem:[#allocation11 + $0xb8] sm:$0xff] }
 0x1c5   :  { %1712 = vmatprep.subr.mxu1 %v1140_v57  ;;  %1669 = vmatprep.subr.mxu0 %v1056_v25  ;;  %v1236_v57 = vld [vmem:[#allocation8 + $0x9e8] sm:$0xff]  ;;  %v1774_v25 = vld [vmem:[#allocation11 + $0x38] sm:$0xff] }
 0x1c6   :  { %1713 = vmatpush1.msra.mxu1 %v1139_v62  ;;  %1670 = vmatpush2.msra.mxu0 %v1055_v24  ;;  %v1235_v62 = vld [vmem:[#allocation8 + $0x9e0] sm:$0xff]  ;;  %v1789_v24 = vld [vmem:[#allocation11 + $0xb0] sm:$0xff] }
 0x1c7   :  { %1714 = vmatprep.subr.mxu1 %v1134_v14  ;;  %1671 = vmatprep.subr.mxu0 %v1050_v54  ;;  %v1230_v14 = vld [vmem:[#allocation8 + $0x9b8] sm:$0xff] }
 0x1c8   :  { %1715 = vmatpush1.msra.mxu1 %v1133_v30  ;;  %1672 = vmatpush2.msra.mxu0 %v1049_v47  ;;  %v1229_v30 = vld [vmem:[#allocation8 + $0x9b0] sm:$0xff] }
 0x1c9   :  { %1716 = vmatprep.subr.mxu1 %v1128_v22  ;;  %1673 = vmatprep.subr.mxu0 %v1044_v33  ;;  %v1773_v54 = vld [vmem:[#allocation11 + $0x30] sm:$0xff]  ;;  %v1224_v22 = vld [vmem:[#allocation8 + $0x988] sm:$0xff] }
 0x1ca   :  { %1717 = vmatpush1.msra.mxu1 %v1127_v9  ;;  %1674 = vmatpush2.msra.mxu0 %v1043_v60  ;;  %v1788_v47 = vld [vmem:[#allocation11 + $0xa8] sm:$0xff]  ;;  %v1223_v9 = vld [vmem:[#allocation8 + $0x980] sm:$0xff] }
 0x1cb   :  { %1718 = vmatprep.subr.mxu1 %v1122_v21  ;;  %1675 = vmatprep.subr.mxu0 %v1038_v37  ;;  %v1772_v33 = vld [vmem:[#allocation11 + $0x28] sm:$0xff]  ;;  %v1218_v21 = vld [vmem:[#allocation8 + $0x958] sm:$0xff]  ;;  %v1787_v60 = vld [vmem:[#allocation11 + $0xa0] sm:$0xff] }
 0x1cc   :  { %1719 = vmatpush1.msra.mxu1 %v1121_v35  ;;  %1676 = vmatpush2.msra.mxu0 %v1037_v49  ;;  %v1217_v35 = vld [vmem:[#allocation8 + $0x950] sm:$0xff]  ;;  %v1771_v37 = vld [vmem:[#allocation11 + $0x20] sm:$0xff]  ;;  %v1786_v49 = vld [vmem:[#allocation11 + $0x98] sm:$0xff] }
 0x1cd   :  { %1720 = vmatprep.subr.mxu1 %v1116_v32  ;;  %1677 = vmatprep.subr.mxu0 %v1032_v26  ;;  %v1212_v32 = vld [vmem:[#allocation8 + $0x928] sm:$0xff]  ;;  %v1770_v26 = vld [vmem:[#allocation11 + $0x18] sm:$0xff] }
 0x1ce   :  { %1721 = vmatpush1.msra.mxu1 %v1115_v13  ;;  %1678 = vmatpush2.msra.mxu0 %v1031_v41  ;;  %v1211_v13 = vld [vmem:[#allocation8 + $0x920] sm:$0xff]  ;;  %v1769_v41 = vld [vmem:[#allocation11 + $0x10] sm:$0xff] }
 0x1cf   :  { %1722 = vmatprep.subr.mxu1 %v1302_v18  ;;  %1679 = vmatprep.subr.mxu0 %v1026_v1  ;;  %v1785_v18 = vld [vmem:[#allocation11 + $0x90] sm:$0xff]  ;;  %v1784_v1 = vld [vmem:[#allocation11 + $0x88] sm:$0xff] }
 0x1d0   :  { %1723 = vmatpush2.msra.mxu1 %v1301_v11  ;;  %1680 = vmatpush2.msra.mxu0 %v1025_v28  ;;  %v1830_v11 = vld [vmem:[#allocation11 + $0x1f8] sm:$0xff]  ;;  %v1768_v28 = vld [vmem:[#allocation11 + $0x8] sm:$0xff] }
 0x1d1   :  { %1724 = vmatprep.subr.mxu1 %v1296_v55  ;;  %1681 = vmatprep.subr.mxu0 %v1020_v42  ;;  %v1814_v55 = vld [vmem:[#allocation11 + $0x178] sm:$0xff]  ;;  %v1783_v42 = vld [vmem:[#allocation11 + $0x80] sm:$0xff] }
 0x1d2   :  { %1725 = vmatpush2.msra.mxu1 %v1295_v6  ;;  %1682 = vmatpush2.msra.mxu0 %v1019_v10  ;;  %v1829_v6 = vld [vmem:[#allocation11 + $0x1f0] sm:$0xff]  ;;  %v1767_v10 = vld [vmem:[#allocation11] sm:$0xff] }
 0x1d3   :  { %1726 = vmatprep.subr.mxu1 %v1290_v3  ;;  %1684 = vmatmul.mubr.f32.vlgmr.msra.gmra.mxu0 %v3104_v12  ;;  %v1779_v12 = vld [vmem:[#allocation11 + $0x60] sm:$0xff]  ;;  %v1813_v3 = vld [vmem:[#allocation11 + $0x170] sm:$0xff] }
 0x1d4   :  { %1727 = vmatpush2.msra.mxu1 %v1289_v38  ;;  %2120 = vmatprep.subr.mxu0 %v1798_v40  ;;  %v1828_v38 = vld [vmem:[#allocation11 + $0x1e8] sm:$0xff]  ;;  %v1827_v40 = vld [vmem:[#allocation11 + $0x1e0] sm:$0xff] }
 0x1d5   :  { %1728 = vmatprep.subr.mxu1 %v1284_v36  ;;  %2121 = vmatpush3.msra.mxu0 %v1782_v61  ;;  %v1812_v36 = vld [vmem:[#allocation11 + $0x168] sm:$0xff]  ;;  %v1810_v61 = vld [vmem:[#allocation11 + $0x158] sm:$0xff] }
 0x1d6   :  { %1729 = vmatpush2.msra.mxu1 %v1283_v4  ;;  %2122 = vmatprep.subr.mxu0 %v1797_v56  ;;  %v1826_v4 = vld [vmem:[#allocation11 + $0x1d8] sm:$0xff] }
 0x1d7   :  { %1730 = vmatprep.subr.mxu1 %v1278_v8  ;;  %2123 = vmatpush3.msra.mxu0 %v1781_v5  ;;  %v1825_v8 = vld [vmem:[#allocation11 + $0x1d0] sm:$0xff]  ;;  %v1862_v56 = vld [vmem:[#allocation11 + $0x2f8] sm:$0xff]  ;;  %v1824_v5 = vld [vmem:[#allocation11 + $0x1c8] sm:$0xff] }
 0x1d8   :  { %1731 = vmatpush2.msra.mxu1 %v1277_v17  ;;  %2124 = vmatprep.subr.mxu0 %v1796_v27  ;;  %v1809_v17 = vld [vmem:[#allocation11 + $0x150] sm:$0xff]  ;;  %v1823_v27 = vld [vmem:[#allocation11 + $0x1c0] sm:$0xff] }
 0x1d9   :  { %1732 = vmatprep.subr.mxu1 %v1272_v7  ;;  %2125 = vmatpush3.msra.mxu0 %v1780_v50  ;;  %v1808_v7 = vld [vmem:[#allocation11 + $0x148] sm:$0xff]  ;;  %v1822_v50 = vld [vmem:[#allocation11 + $0x1b8] sm:$0xff] }
 0x1da   :  { %1733 = vmatpush2.msra.mxu1 %v1271_v15  ;;  %2126 = vmatprep.subr.mxu0 %v1795_v45  ;;  %v1807_v15 = vld [vmem:[#allocation11 + $0x140] sm:$0xff]  ;;  %v1821_v45 = vld [vmem:[#allocation11 + $0x1b0] sm:$0xff] }
 0x1db   :  { %1734 = vmatprep.subr.mxu1 %v1266_v46  ;;  %2127 = vmatpush3.msra.mxu0 %v1779_v12  ;;  %v1806_v46 = vld [vmem:[#allocation11 + $0x138] sm:$0xff]  ;;  %v1820_v12 = vld [vmem:[#allocation11 + $0x1a8] sm:$0xff] }
 0x1dc   :  { %1735 = vmatpush2.msra.mxu1 %v1265_v16  ;;  %2128 = vmatprep.subr.mxu0 %v1794_v19  ;;  %v1805_v16 = vld [vmem:[#allocation11 + $0x130] sm:$0xff]  ;;  %v1819_v19 = vld [vmem:[#allocation11 + $0x1a0] sm:$0xff] }
 0x1dd   :  { %1736 = vmatprep.subr.mxu1 %v1260_v52  ;;  %2129 = vmatpush3.msra.mxu0 %v1778_v59  ;;  %v1804_v52 = vld [vmem:[#allocation11 + $0x128] sm:$0xff]  ;;  %v1818_v59 = vld [vmem:[#allocation11 + $0x198] sm:$0xff] }
 0x1de   :  { %1737 = vmatpush2.msra.mxu1 %v1259_v20  ;;  %2130 = vmatprep.subr.mxu0 %v1793_v31  ;;  %v1803_v20 = vld [vmem:[#allocation11 + $0x120] sm:$0xff]  ;;  %v1817_v31 = vld [vmem:[#allocation11 + $0x190] sm:$0xff] }
 0x1df   :  { %1738 = vmatprep.subr.mxu1 %v1254_v2  ;;  %2131 = vmatpush3.msra.mxu0 %v1777_v58  ;;  %v1802_v2 = vld [vmem:[#allocation11 + $0x118] sm:$0xff]  ;;  %v1816_v58 = vld [vmem:[#allocation11 + $0x188] sm:$0xff] }
 0x1e0   :  { %1739 = vmatpush2.msra.mxu1 %v1253_v39  ;;  %2132 = vmatprep.subr.mxu0 %v1792_v29  ;;  %v1801_v39 = vld [vmem:[#allocation11 + $0x110] sm:$0xff]  ;;  %v1815_v29 = vld [vmem:[#allocation11 + $0x180] sm:$0xff] }
 0x1e1   :  { %1740 = vmatprep.subr.mxu1 %v1248_v51  ;;  %2133 = vmatpush3.msra.mxu0 %v1776_v34  ;;  %v1800_v51 = vld [vmem:[#allocation11 + $0x108] sm:$0xff]  ;;  %v1305_v34 = vlaneseq }
 0x1e2   :  { %1741 = vmatpush2.msra.mxu1 %v1247_v23  ;;  %2134 = vmatprep.subr.mxu0 %v1791_v43  ;;  %v1799_v23 = vld [vmem:[#allocation11 + $0x100] sm:$0xff] }
 0x1e3   :  { %1742 = vmatprep.subr.mxu1 %v1242_v44  ;;  %2135 = vmatpush3.msra.mxu0 %v1775_v53  ;;  %v3124_v44 = vshrl.u32 %v1305_v34, 7 }
 0x1e4   :  { %1743 = vmatpush2.msra.mxu1 %v1241_v48  ;;  %2136 = vmatprep.subr.mxu0 %v1790_v0  ;;  %v3127_v48 = vld [vmem:[#allocation9] sm:$0x3f] }
 0x1e5   :  { %1744 = vmatprep.subr.mxu1 %v1236_v57  ;;  %2137 = vmatpush3.msra.mxu0 %v1774_v25  ;;  %v1307_v43 = vsub.s32 0, %v3124_v44  ;;  %v1311_v53 = vsub.s32 1, %v3124_v44 }
 0x1e6   :  { %1745 = vmatpush2.msra.mxu1 %v1235_v62  ;;  %2138 = vmatprep.subr.mxu0 %v1789_v24 }
 0x1e7   :  { %1746 = vmatprep.subr.mxu1 %v1230_v14  ;;  %2139 = vmatpush3.msra.mxu0 %v1773_v54  ;;  %v1308_v0 = vrot.slane %v3127_v48, %v1307_v43  ;;  %v1312_v62 = vrot.slane %v3127_v48, %v1311_v53 }
 0x1e8   :  { %1747 = vmatpush2.msra.mxu1 %v1229_v30  ;;  %2140 = vmatprep.subr.mxu0 %v1788_v47 }
 0x1e9   :  { %1748 = vmatprep.subr.mxu1 %v1224_v22  ;;  %2141 = vmatpush3.msra.mxu0 %v1772_v33 }
 0x1ea   :  { %1749 = vmatpush2.msra.mxu1 %v1223_v9  ;;  %2142 = vmatprep.subr.mxu0 %v1787_v60  ;;  %v1861_v60 = vld [vmem:[#allocation11 + $0x2f0] sm:$0xff] }
 0x1eb   :  { %1750 = vmatprep.subr.mxu1 %v1218_v21  ;;  %2143 = vmatpush3.msra.mxu0 %v1771_v37  ;;  %v1846_v21 = vld [vmem:[#allocation11 + $0x278] sm:$0xff]  ;;  %v1860_v37 = vld [vmem:[#allocation11 + $0x2e8] sm:$0xff] }
 0x1ec   :  { %1751 = vmatpush2.msra.mxu1 %v1217_v35  ;;  %2144 = vmatprep.subr.mxu0 %v1786_v49  ;;  %v1845_v35 = vld [vmem:[#allocation11 + $0x270] sm:$0xff]  ;;  %v1859_v49 = vld [vmem:[#allocation11 + $0x2e0] sm:$0xff] }
 0x1ed   :  { %1752 = vmatprep.subr.mxu1 %v1212_v32  ;;  %2145 = vmatpush3.msra.mxu0 %v1770_v26  ;;  %v1844_v32 = vld [vmem:[#allocation11 + $0x268] sm:$0xff]  ;;  %v1858_v26 = vld [vmem:[#allocation11 + $0x2d8] sm:$0xff] }
 0x1ee   :  { %1753 = vmatpush2.msra.mxu1 %v1211_v13  ;;  %2146 = vmatprep.subr.mxu0 %v1785_v18  ;;  %v1843_v13 = vld [vmem:[#allocation11 + $0x260] sm:$0xff]  ;;  %v1842_v18 = vld [vmem:[#allocation11 + $0x258] sm:$0xff] }
 0x1ef   :  { %1755 = vmatmul.mubr.f32.vlgmr.msra.gmra.mxu1 %v3113_v63  ;;  %2147 = vmatpush3.msra.mxu0 %v1769_v41  ;;  %v1811_v63 = vld [vmem:[#allocation11 + $0x160] sm:$0xff]  ;;  %v1857_v41 = vld [vmem:[#allocation11 + $0x2d0] sm:$0xff] }
 0x1f0   :  { %2155 = vmatprep.subr.mxu1 %v1830_v11  ;;  %2148 = vmatprep.subr.mxu0 %v1784_v1  ;;  %v1841_v11 = vld [vmem:[#allocation11 + $0x250] sm:$0xff]  ;;  %v1856_v1 = vld [vmem:[#allocation11 + $0x2c8] sm:$0xff] }
 0x1f1   :  { %2156 = vmatpush3.msra.mxu1 %v1814_v55  ;;  %2149 = vmatpush3.msra.mxu0 %v1768_v28  ;;  %v1840_v55 = vld [vmem:[#allocation11 + $0x248] sm:$0xff]  ;;  %v1855_v28 = vld [vmem:[#allocation11 + $0x2c0] sm:$0xff] }
 0x1f2   :  { %2157 = vmatprep.subr.mxu1 %v1829_v6  ;;  %2150 = vmatprep.subr.mxu0 %v1783_v42  ;;  %v1839_v6 = vld [vmem:[#allocation11 + $0x240] sm:$0xff]  ;;  %v1854_v42 = vld [vmem:[#allocation11 + $0x2b8] sm:$0xff] }
 0x1f3   :  { %2158 = vmatpush3.msra.mxu1 %v1813_v3  ;;  %2151 = vmatpush3.msra.mxu0 %v1767_v10  ;;  %v1838_v3 = vld [vmem:[#allocation11 + $0x238] sm:$0xff]  ;;  %v1853_v10 = vld [vmem:[#allocation11 + $0x2b0] sm:$0xff] }
 0x1f4   :  { %2159 = vmatprep.subr.mxu1 %v1828_v38  ;;  %2190 = vmatprep.subr.mxu0 %v1862_v56  ;;  %v1837_v38 = vld [vmem:[#allocation11 + $0x230] sm:$0xff] }
 0x1f5   :  { %2160 = vmatpush3.msra.mxu1 %v1812_v36  ;;  %v1852_v36 = vld [vmem:[#allocation11 + $0x2a8] sm:$0xff]  ;;  %v1849_v56 = vld [vmem:[#allocation11 + $0x290] sm:$0xff] }
 0x1f6   :  { %2161 = vmatprep.subr.mxu1 %v1827_v40  ;;  %v1836_v40 = vld [vmem:[#allocation11 + $0x228] sm:$0xff] }
 0x1f7   :  { %2162 = vmatpush3.msra.mxu1 %v1811_v63  ;;  %v1851_v63 = vld [vmem:[#allocation11 + $0x2a0] sm:$0xff] }
 0x1f8   :  { %2163 = vmatprep.subr.mxu1 %v1826_v4  ;;  %v1835_v4 = vld [vmem:[#allocation11 + $0x220] sm:$0xff] }
 0x1f9   :  { %2164 = vmatpush3.msra.mxu1 %v1810_v61  ;;  %v1850_v61 = vld [vmem:[#allocation11 + $0x298] sm:$0xff] }
 0x1fa   :  { %2165 = vmatprep.subr.mxu1 %v1825_v8  ;;  %v1834_v8 = vld [vmem:[#allocation11 + $0x218] sm:$0xff] }
 0x1fb   :  { %2166 = vmatpush3.msra.mxu1 %v1809_v17  ;;  %v1833_v17 = vld [vmem:[#allocation11 + $0x210] sm:$0xff] }
 0x1fc   :  { %2167 = vmatprep.subr.mxu1 %v1824_v5  ;;  %v1848_v5 = vld [vmem:[#allocation11 + $0x288] sm:$0xff] }
 0x1fd   :  { %2168 = vmatpush3.msra.mxu1 %v1808_v7  ;;  %v1832_v7 = vld [vmem:[#allocation11 + $0x208] sm:$0xff] }
 0x1fe   :  { %2169 = vmatprep.subr.mxu1 %v1823_v27  ;;  %v1847_v27 = vld [vmem:[#allocation11 + $0x280] sm:$0xff] }
 0x1ff   :  { %2170 = vmatpush3.msra.mxu1 %v1807_v15  ;;  %v1831_v15 = vld [vmem:[#allocation11 + $0x200] sm:$0xff] }
 0x200   :  { %2171 = vmatprep.subr.mxu1 %v1822_v50  ;;  %v1315_v50 = vsub.s32 2, %v3124_v44 }
 0x201   :  { %2172 = vmatpush3.msra.mxu1 %v1806_v46  ;;  %v1319_v46 = vsub.s32 3, %v3124_v44 }
 0x202   :  { %2173 = vmatprep.subr.mxu1 %v1821_v45 }
 0x203   :  { %2174 = vmatpush3.msra.mxu1 %v1805_v16  ;;  %v1316_v16 = vrot.slane %v3127_v48, %v1315_v50 }
 0x204   :  { %2175 = vmatprep.subr.mxu1 %v1820_v12  ;;  %v1320_v12 = vrot.slane %v3127_v48, %v1319_v46 }
 0x205   :  { %2176 = vmatpush3.msra.mxu1 %v1804_v52 }
 0x206   :  { %2177 = vmatprep.subr.mxu1 %v1819_v19 }
 0x207   :  { %2178 = vmatpush3.msra.mxu1 %v1803_v20 }
 0x208   :  { %2179 = vmatprep.subr.mxu1 %v1818_v59 }
 0x209   :  { %2180 = vmatpush3.msra.mxu1 %v1802_v2 }
 0x20a   :  { %2181 = vmatprep.subr.mxu1 %v1817_v31 }
 0x20b   :  { %2182 = vmatpush3.msra.mxu1 %v1801_v39 }
 0x20c   :  { %2183 = vmatprep.subr.mxu1 %v1816_v58 }
 0x20d   :  { %2184 = vmatpush3.msra.mxu1 %v1800_v51 }
 0x20e   :  { %2185 = vmatprep.subr.mxu1 %v1815_v29  ;;  %v1401_v57 = vpop.f32.mrf.mxu0  ;;  %v1323_v29 = vsub.s32 4, %v3124_v44 }
 0x20f   :  { %2186 = vmatpush3.msra.mxu1 %v1799_v23  ;;  %v1402_v14 = vadd.f32 %v1401_v57, %v1308_v0  ;;  %v1327_v23 = vsub.s32 5, %v3124_v44 }
 0x210   :  { %v1403_v25 = vpop.f32.mrf.mxu0  ;;  %v1324_v43 = vrot.slane %v3127_v48, %v1323_v29 }
 0x211   :  { %v1404_v30 = vadd.f32 %v1403_v25, %v1312_v62  ;;  %v1328_v53 = vrot.slane %v3127_v48, %v1327_v23 }
 0x22f   :  { %v1472_v24 = vpop.f32.mrf.mxu1 }
 0x230   :  { %v1473_v54 = vadd.f32 %v1472_v24, %v1402_v14 }
 0x231   :  { %v1474_v22 = vpop.f32.mrf.mxu1 }
 0x232   :  { %v1475_v47 = vadd.f32 %v1474_v22, %v1404_v30  ;;  %v1761_v33 = vmax.f32 %v1473_v54, 0.0 }
 0x234   :  { %v1762_v9 = vmax.f32 %v1475_v47, 0.0 }
 0x236   :  { %1934 = vmatprep.mubr.f32.mxu0 %v1762_v9 }
 0x237   :  { %1935 = vmatmul.mubr.f32.vlgmr.msra.gmra.mxu0 %v1761_v33 }
 0x238   :  { %2191 = vmatpush3.msra.mxu0 %v1846_v21 }
 0x239   :  { %2192 = vmatprep.subr.mxu0 %v1861_v60  ;;  %v2107_v60 = vld [vmem:[#allocation12] ss:$0 sm:$0xff] }
 0x23a   :  { %2193 = vmatpush3.msra.mxu0 %v1845_v35 }
 0x23b   :  { %2194 = vmatprep.subr.mxu0 %v1860_v37 }
 0x23c   :  { %2195 = vmatpush3.msra.mxu0 %v1844_v32 }
 0x23d   :  { %2196 = vmatprep.subr.mxu0 %v1859_v49 }
 0x23e   :  { %2197 = vmatpush3.msra.mxu0 %v1843_v13 }
 0x23f   :  { %2198 = vmatprep.subr.mxu0 %v1858_v26 }
 0x240   :  { %2199 = vmatpush3.msra.mxu0 %v1842_v18 }
 0x241   :  { %2200 = vmatprep.subr.mxu0 %v1857_v41 }
 0x242   :  { %2201 = vmatpush3.msra.mxu0 %v1841_v11 }
 0x243   :  { %2202 = vmatprep.subr.mxu0 %v1856_v1 }
 0x244   :  { %2203 = vmatpush3.msra.mxu0 %v1840_v55 }
 0x245   :  { %2204 = vmatprep.subr.mxu0 %v1855_v28 }
 0x246   :  { %2205 = vmatpush3.msra.mxu0 %v1839_v6 }
 0x247   :  { %2206 = vmatprep.subr.mxu0 %v1854_v42 }
 0x248   :  { %2207 = vmatpush3.msra.mxu0 %v1838_v3 }
 0x249   :  { %2208 = vmatprep.subr.mxu0 %v1853_v10 }
 0x24a   :  { %2209 = vmatpush3.msra.mxu0 %v1837_v38 }
 0x24b   :  { %2210 = vmatprep.subr.mxu0 %v1852_v36 }
 0x24c   :  { %2211 = vmatpush3.msra.mxu0 %v1836_v40 }
 0x24d   :  { %2212 = vmatprep.subr.mxu0 %v1851_v63 }
 0x24e   :  { %2213 = vmatpush3.msra.mxu0 %v1835_v4 }
 0x24f   :  { %2214 = vmatprep.subr.mxu0 %v1850_v61  ;;  %v1543_v45 = vpop.f32.mrf.mxu0 }
 0x250   :  { %2215 = vmatpush3.msra.mxu0 %v1834_v8  ;;  %v1544_v19 = vadd.f32 %v1543_v45, %v1316_v16 }
 0x251   :  { %2216 = vmatprep.subr.mxu0 %v1849_v56  ;;  %v1545_v52 = vpop.f32.mrf.mxu0 }
 0x252   :  { %2217 = vmatpush3.msra.mxu0 %v1833_v17  ;;  %v1546_v59 = vadd.f32 %v1545_v52, %v1320_v12 }
 0x253   :  { %2218 = vmatprep.subr.mxu0 %v1848_v5 }
 0x254   :  { %2219 = vmatpush3.msra.mxu0 %v1832_v7 }
 0x255   :  { %2220 = vmatprep.subr.mxu0 %v1847_v27 }
 0x256   :  { %2221 = vmatpush3.msra.mxu0 %v1831_v15 }
 0x26f   :  { %v1614_v20 = vpop.f32.mrf.mxu1 }
 0x270   :  { %v1615_v2 = vadd.f32 %v1614_v20, %v1544_v19 }
 0x271   :  { %v1616_v31 = vpop.f32.mrf.mxu1 }
 0x272   :  { %v1617_v39 = vadd.f32 %v1616_v31, %v1546_v59  ;;  %v1763_v51 = vmax.f32 %v1615_v2, 0.0 }
 0x274   :  { %v1764_v58 = vmax.f32 %v1617_v39, 0.0 }
 0x276   :  { %2004 = vmatprep.mubr.f32.mxu1 %v1764_v58 }
 0x277   :  { %2005 = vmatmul.mubr.f32.vlgmr.msra.gmra.mxu1 %v1763_v51 }
 0x293   :  { %v1685_v34 = vpop.f32.mrf.mxu0 }
 0x294   :  { %v1686_v0 = vadd.f32 %v1685_v34, %v1324_v43 }
 0x295   :  { %v1687_v57 = vpop.f32.mrf.mxu0 }
 0x296   :  { %v1688_v25 = vadd.f32 %v1687_v57, %v1328_v53 }
 0x2af   :  { %v1756_v62 = vpop.f32.mrf.mxu1 }
 0x2b0   :  { %v1757_v14 = vadd.f32 %v1756_v62, %v1686_v0 }
 0x2b1   :  { %v1758_v24 = vpop.f32.mrf.mxu1 }
 0x2b2   :  { %v1759_v30 = vadd.f32 %v1758_v24, %v1688_v25  ;;  %v1765_v22 = vmax.f32 %v1757_v14, 0.0 }
 0x2b4   :  { %v1766_v54 = vmax.f32 %v1759_v30, 0.0 }
 0x2b6   :  { %2074 = vmatprep.mubr.f32.mxu0 %v1766_v54 }
 0x2b7   :  { %2075 = vmatmul.mubr.f32.vlgmr.msra.gmra.mxu0 %v1765_v22 }
 0x2f7   :  { %v2152_v47 = vpop.f32.mrf.mxu0 }
 0x2f9   :  { %v2153_v33 = vpop.f32.mrf.mxu0 }
 0x2fa   :  { %v2154_v21 = vadd.f32 %v2153_v33, %v2152_v47 }
 0x2fc   :  { %v1937_v48 = vadd.f32 %v2154_v21, %v2107_v60 }
 0x337   :  { %v2187_v9 = vpop.f32.mrf.mxu1 }
 0x339   :  { %v2188_v44 = vpop.f32.mrf.mxu1 }
 0x33a   :  { %v2189_v35 = vadd.f32 %v2188_v44, %v2187_v9 }
 0x33c   :  { %v2007_v49 = vadd.f32 %v2189_v35, %v1937_v48 }
 0x377   :  { %v2222_v37 = vpop.f32.mrf.mxu0 }
 0x379   :  { %v2223_v32 = vpop.f32.mrf.mxu0 }
 0x37a   :  { %v2224_v13 = vadd.f32 %v2223_v32, %v2222_v37 }
 0x37c   :  { %v2077_v26 = vadd.f32 %v2224_v13, %v2007_v49 }
 0x37e   :  { %2080 = vst [vmem:[#allocation14] sm:$0xff] %v2077_v26 }
 0x37f   :  { %2399 = shalt.err (!%p2396_p6)
}
 0x380   :  { %2090 = dma.vmem_to_hbm [thread:$0]  %s2088_s18, 128, %s3150_s7, [#allocation5]  }
 0x381   :  { %2416 = dma.done.wait [#allocation5], 128  }
 0x382   :  { %2417 = vsyncadd [#allocation5], 4294967168 }
 0x383   :  { %2094 = vsyncpa [#allocation4], 1 }
 0x384   :  { %2095 = vsyncpa [#allocation7], 1 }
 0x385   :  { %2096 = vsyncpa [#allocation10], 1 }
 0x386   :  { %2097 = vsyncpa [#allocation13], 1 }
 0x387   :  { %2098 = vsyncpa [#allocation5], 1 }

</bundles_post_ra>
